<compile_context>
chip_gen: v5e
topology: v5e:2x2
jax: 0.10.0
libtpu: 0.0.40
codegen_flags: <defaults>
</compile_context>

<pallas_src>
import functools

import jax
import jax.numpy as jnp
import numpy as np
from jax.experimental import pallas as pl
from jax.experimental.pallas import tpu as pltpu


# ---------------------------------------------------------------------------
# Pallas kernel: depthwise conv ('same', groups=C) + bias + channel scale,
# NHWC layout, channels on lanes.
# ---------------------------------------------------------------------------
def dwconv_scale_pallas(x_nhwc, w, b, s, kernel_size):
    """x_nhwc: (B, H, W, C) f32, w: (C, K, K), b: (C,), s: (C,) -> (B, H, W, C)."""
    B, H, W, C = x_nhwc.shape
    K = kernel_size
    KK = K * K
    pad = K // 2
    Hp, Wp = H + 2 * pad, W + 2 * pad

    # Fold the channel-wise scale into taps and bias on the host.
    s32 = s.astype(jnp.float32)
    w_f = (w.astype(jnp.float32) * s32[:, None, None]).reshape(C, KK).T   # (K*K, C)
    b_f = (b.astype(jnp.float32) * s32).reshape(1, C)                     # (1, C)

    # Channel blocking: lane-dense 128-wide blocks when C allows, otherwise a
    # single full-channel block (block dim == full dim satisfies the tiling rule).
    C_BLK = 128 if C % 128 == 0 else C
    n_cb = C // C_BLK

    def kernel(x_ref, w_ref, b_ref, o_ref, xs_ref):
        # Zero-padded halo buffer in VMEM ('same' padding handled in-kernel).
        xs_ref[...] = jnp.zeros_like(xs_ref)
        xs_ref[:, pad:pad + H, pad:pad + W, :] = x_ref[...].astype(jnp.float32)

        acc = jnp.zeros((1, H, W, C_BLK), jnp.float32)
        for dh in range(K):
            for dw in range(K):
                idx = dh * K + dw
                tap = w_ref[idx:idx + 1, :].reshape(1, 1, 1, C_BLK)  # per-channel tap
                acc = acc + xs_ref[:, dh:dh + H, dw:dw + W, :] * tap
        bias = b_ref[...].reshape(1, 1, 1, C_BLK)
        o_ref[...] = (acc + bias).astype(o_ref.dtype)

    cost = pl.CostEstimate(
        flops=2 * B * C * H * W * KK,
        transcendentals=0,
        bytes_accessed=2 * B * C * H * W * 4 + (KK + 1) * C * 4,
    )

    return pl.pallas_call(
        kernel,
        out_shape=jax.ShapeDtypeStruct((B, H, W, C), x_nhwc.dtype),
        grid=(B, n_cb),
        in_specs=[
            pl.BlockSpec((1, H, W, C_BLK), lambda bi, cb: (bi, 0, 0, cb)),
            pl.BlockSpec((KK, C_BLK), lambda bi, cb: (0, cb)),
            pl.BlockSpec((1, C_BLK), lambda bi, cb: (0, cb)),
        ],
        out_specs=pl.BlockSpec((1, H, W, C_BLK), lambda bi, cb: (bi, 0, 0, cb)),
        scratch_shapes=[pltpu.VMEM((1, Hp, Wp, C_BLK), jnp.float32)],
        compiler_params=pltpu.CompilerParams(
            dimension_semantics=("parallel", "parallel"),
            vmem_limit_bytes=32 * 1024 * 1024,
        ),
        cost_estimate=cost,
    )(x_nhwc, w_f, b_f)


# ---------------------------------------------------------------------------
# Haar WT / IWT / padded add in NHWC (JAX glue used around the Pallas conv)
# ---------------------------------------------------------------------------
def wt_nhwc(x):
    Bsz, H, W, C = x.shape
    x = x[:, : 2 * (H // 2), : 2 * (W // 2), :]
    a = x[:, 0::2, 0::2, :]
    b = x[:, 0::2, 1::2, :]
    c = x[:, 1::2, 0::2, :]
    d = x[:, 1::2, 1::2, :]
    ll = (a + b + c + d) * 0.5
    lh = (a - b + c - d) * 0.5
    hl = (a + b - c - d) * 0.5
    hh = (a - b - c + d) * 0.5
    return ll, lh, hl, hh


def iwt_nhwc(ll, lh, hl, hh):
    Bsz, h, w, C = ll.shape
    a = (ll + lh + hl + hh) * 0.5
    b = (ll - lh + hl - hh) * 0.5
    c = (ll + lh - hl - hh) * 0.5
    d = (ll - lh - hl + hh) * 0.5
    out = jnp.zeros((Bsz, 2 * h, 2 * w, C), ll.dtype)
    out = out.at[:, 0::2, 0::2, :].set(a)
    out = out.at[:, 0::2, 1::2, :].set(b)
    out = out.at[:, 1::2, 0::2, :].set(c)
    out = out.at[:, 1::2, 1::2, :].set(d)
    return out


def add_pad_nhwc(a, b):
    H = max(a.shape[1], b.shape[1])
    W = max(a.shape[2], b.shape[2])

    def pad_to(t):
        ph, pw = H - t.shape[1], W - t.shape[2]
        if ph or pw:
            t = jnp.pad(t, ((0, 0), (0, ph), (0, pw), (0, 0)))
        return t

    return pad_to(a) + pad_to(b)


# ---------------------------------------------------------------------------
# WTConv forward using the Pallas conv (single NCHW<->NHWC transpose at the
# boundaries; all levels run channels-on-lanes).
# ---------------------------------------------------------------------------
def wtconv_forward_pallas(x, params, levels, kernel_size):
    x_nhwc = jnp.transpose(x, (0, 2, 3, 1))

    w0, b0, s0 = params[0]
    Y0 = dwconv_scale_pallas(x_nhwc, w0, b0, s0, kernel_size)
    if levels == 0:
        return jnp.transpose(Y0, (0, 3, 1, 2))

    X_LL = x_nhwc
    Ys = []
    for i in range(1, levels + 1):
        ll, lh, hl, hh = wt_nhwc(X_LL)
        cat = jnp.concatenate([ll, lh, hl, hh], axis=-1)
        wi, bi, si = params[i]
        y = dwconv_scale_pallas(cat, wi, bi, si, kernel_size)
        Y_LL, Y_LH, Y_HL, Y_HH = jnp.split(y, 4, axis=-1)
        Ys.append((Y_LL, Y_LH, Y_HL, Y_HH))
        X_LL = ll

    Z = jnp.zeros_like(Ys[-1][0])
    for Y_LL, Y_LH, Y_HL, Y_HH in reversed(Ys):
        Z = iwt_nhwc(add_pad_nhwc(Y_LL, Z), Y_LH, Y_HL, Y_HH)
    Z = add_pad_nhwc(Y0, Z)
    return jnp.transpose(Z, (0, 3, 1, 2))


# ---------------------------------------------------------------------------
# Pure-JAX reference (NCHW, lax conv) for correctness checking
# ---------------------------------------------------------------------------
def dwconv_scale_ref(x, w, b, s, kernel_size):
    C = x.shape[1]
    K = kernel_size
    out = jax.lax.conv_general_dilated(
        x, w.reshape(C, 1, K, K),
        window_strides=(1, 1), padding="SAME",
        dimension_numbers=("NCHW", "OIHW", "NCHW"),
        feature_group_count=C)
    return (out + b.reshape(1, -1, 1, 1)) * s.reshape(1, -1, 1, 1)


def wt_nchw(x):
    Bsz, C, H, W = x.shape
    x = x[:, :, : 2 * (H // 2), : 2 * (W // 2)]
    a = x[:, :, 0::2, 0::2]
    b = x[:, :, 0::2, 1::2]
    c = x[:, :, 1::2, 0::2]
    d = x[:, :, 1::2, 1::2]
    return ((a + b + c + d) * 0.5, (a - b + c - d) * 0.5,
            (a + b - c - d) * 0.5, (a - b - c + d) * 0.5)


def iwt_nchw(ll, lh, hl, hh):
    Bsz, C, h, w = ll.shape
    a = (ll + lh + hl + hh) * 0.5
    b = (ll - lh + hl - hh) * 0.5
    c = (ll + lh - hl - hh) * 0.5
    d = (ll - lh - hl + hh) * 0.5
    out = jnp.zeros((Bsz, C, 2 * h, 2 * w), ll.dtype)
    out = out.at[:, :, 0::2, 0::2].set(a)
    out = out.at[:, :, 0::2, 1::2].set(b)
    out = out.at[:, :, 1::2, 0::2].set(c)
    out = out.at[:, :, 1::2, 1::2].set(d)
    return out


def add_pad_nchw(a, b):
    H = max(a.shape[2], b.shape[2])
    W = max(a.shape[3], b.shape[3])

    def pad_to(t):
        ph, pw = H - t.shape[2], W - t.shape[3]
        if ph or pw:
            t = jnp.pad(t, ((0, 0), (0, 0), (0, ph), (0, pw)))
        return t

    return pad_to(a) + pad_to(b)


def wtconv_forward_ref(x, params, levels, kernel_size):
    X_LL = x
    w0, b0, s0 = params[0]
    Y0 = dwconv_scale_ref(X_LL, w0, b0, s0, kernel_size)
    if levels == 0:
        return Y0
    Ys = []
    for i in range(1, levels + 1):
        ll, lh, hl, hh = wt_nchw(X_LL)
        cat = jnp.concatenate([ll, lh, hl, hh], axis=1)
        wi, bi, si = params[i]
        y = dwconv_scale_ref(cat, wi, bi, si, kernel_size)
        Y_LL, Y_LH, Y_HL, Y_HH = jnp.split(y, 4, axis=1)
        Ys.append((Y_LL, Y_LH, Y_HL, Y_HH))
        X_LL = ll
    Z = jnp.zeros_like(Ys[-1][0])
    for Y_LL, Y_LH, Y_HL, Y_HH in reversed(Ys):
        Z = iwt_nchw(add_pad_nchw(Y_LL, Z), Y_LH, Y_HL, Y_HH)
    return add_pad_nchw(Y0, Z)


# ---------------------------------------------------------------------------
if __name__ == "__main__":
    B, C, H, W = 2, 4, 16, 16
    levels = 2
    K = 3

    key = jax.random.PRNGKey(0)
    keys = jax.random.split(key, 1 + 3 * (levels + 1))
    x = jax.random.normal(keys[0], (B, C, H, W), jnp.float32)

    # Deterministic parameter init (depthwise weight (Cn,K,K); bias only at
    # level 0 as in the PyTorch module; channel-wise scale (Cn,)).
    params = []
    for i in range(levels + 1):
        Cn = C if i == 0 else 4 * C
        kw, kb, ks = keys[1 + 3 * i], keys[2 + 3 * i], keys[3 + 3 * i]
        w = 0.2 * jax.random.normal(kw, (Cn, K, K), jnp.float32)
        if i == 0:
            b = 0.1 * jax.random.normal(kb, (Cn,), jnp.float32)
        else:
            b = jnp.zeros((Cn,), jnp.float32)   # conv bias=False for levels > 0
        s = 1.0 + 0.1 * jax.random.normal(ks, (Cn,), jnp.float32)
        params.append((w, b, s))

    fwd = jax.jit(functools.partial(
        wtconv_forward_pallas, params=params, levels=levels, kernel_size=K))
    out = jax.block_until_ready(fwd(x))

    ref = jax.block_until_ready(wtconv_forward_ref(x, params, levels, K))

    assert out.shape == (B, C, H, W)
    np.testing.assert_allclose(np.asarray(out), np.asarray(ref),
                               rtol=1e-4, atol=1e-4)
    print("KERNEL_OK")
</pallas_src>

<mosaic_0001>
module attributes {stable_mosaic.version = 11 : i64} {
  func.func @kernel(%arg0: i32, %arg1: i32, %arg2: memref<1x16x16x4xf32, #tpu.memory_space<vmem>>, %arg3: memref<9x4xf32, #tpu.memory_space<vmem>>, %arg4: memref<1x4xf32, #tpu.memory_space<vmem>>, %arg5: memref<1x16x16x4xf32, #tpu.memory_space<vmem>>, %arg6: memref<1x18x18x4xf32, #tpu.memory_space<vmem>>) attributes {dimension_semantics = [#tpu.dimension_semantics<parallel>, #tpu.dimension_semantics<parallel>], iteration_bounds = array<i64: 2, 1>, scalar_prefetch = 0 : i64, scratch_operands = 1 : i64, tpu.core_type = #tpu.core_type<tc>, window_params = [{transform_indices = @transform_0, window_bounds = array<i64: 1, 16, 16, 4>}, {transform_indices = @transform_1, window_bounds = array<i64: 9, 4>}, {transform_indices = @transform_2, window_bounds = array<i64: 1, 4>}, {transform_indices = @transform_3, window_bounds = array<i64: 1, 16, 16, 4>}]} {
    %cst = arith.constant 0.000000e+00 : f32
    %0 = vector.broadcast %cst : f32 to vector<1x18x18x4xf32>
    %c0 = arith.constant 0 : index
    %c0_0 = arith.constant 0 : index
    %c0_1 = arith.constant 0 : index
    %c0_2 = arith.constant 0 : index
    %1 = vector.load %arg6[%c0, %c0_0, %c0_1, %c0_2] : memref<1x18x18x4xf32, #tpu.memory_space<vmem>>, vector<1x18x18x4xf32>
    tpu.vector_store %arg6[%c0, %c0_0, %c0_1, %c0_2], %0 {strides = array<i32>} : memref<1x18x18x4xf32, #tpu.memory_space<vmem>>, vector<1x18x18x4xf32>,
    %c0_3 = arith.constant 0 : index
    %c0_4 = arith.constant 0 : index
    %c0_5 = arith.constant 0 : index
    %c0_6 = arith.constant 0 : index
    %2 = vector.load %arg2[%c0_3, %c0_4, %c0_5, %c0_6] : memref<1x16x16x4xf32, #tpu.memory_space<vmem>>, vector<1x16x16x4xf32>
    %c0_7 = arith.constant 0 : index
    %c1 = arith.constant 1 : index
    %c1_8 = arith.constant 1 : index
    %c0_9 = arith.constant 0 : index
    %3 = vector.load %arg6[%c0_7, %c1, %c1_8, %c0_9] : memref<1x18x18x4xf32, #tpu.memory_space<vmem>>, vector<1x16x16x4xf32>
    tpu.vector_store %arg6[%c0_7, %c1, %c1_8, %c0_9], %2 {strides = array<i32>} : memref<1x18x18x4xf32, #tpu.memory_space<vmem>>, vector<1x16x16x4xf32>,
    %cst_10 = arith.constant 0.000000e+00 : f32
    %4 = vector.broadcast %cst_10 : f32 to vector<1x16x16x4xf32>
    %c0_11 = arith.constant 0 : index
    %c0_12 = arith.constant 0 : index
    %5 = vector.load %arg3[%c0_11, %c0_12] : memref<9x4xf32, #tpu.memory_space<vmem>>, vector<1x4xf32>
    %6 = vector.shape_cast %5 : vector<1x4xf32> to vector<1x1x1x4xf32>
    %c0_13 = arith.constant 0 : index
    %c0_14 = arith.constant 0 : index
    %c0_15 = arith.constant 0 : index
    %c0_16 = arith.constant 0 : index
    %7 = vector.load %arg6[%c0_13, %c0_14, %c0_15, %c0_16] : memref<1x18x18x4xf32, #tpu.memory_space<vmem>>, vector<1x16x16x4xf32>
    %8 = vector.broadcast %6 : vector<1x1x1x4xf32> to vector<1x16x16x4xf32>
    %9 = arith.mulf %7, %8 : vector<1x16x16x4xf32>
    %10 = arith.addf %4, %9 : vector<1x16x16x4xf32>
    %c1_17 = arith.constant 1 : index
    %c0_18 = arith.constant 0 : index
    %11 = vector.load %arg3[%c1_17, %c0_18] : memref<9x4xf32, #tpu.memory_space<vmem>>, vector<1x4xf32>
    %12 = vector.shape_cast %11 : vector<1x4xf32> to vector<1x1x1x4xf32>
    %c0_19 = arith.constant 0 : index
    %c0_20 = arith.constant 0 : index
    %c1_21 = arith.constant 1 : index
    %c0_22 = arith.constant 0 : index
    %13 = vector.load %arg6[%c0_19, %c0_20, %c1_21, %c0_22] : memref<1x18x18x4xf32, #tpu.memory_space<vmem>>, vector<1x16x16x4xf32>
    %14 = vector.broadcast %12 : vector<1x1x1x4xf32> to vector<1x16x16x4xf32>
    %15 = arith.mulf %13, %14 : vector<1x16x16x4xf32>
    %16 = arith.addf %10, %15 : vector<1x16x16x4xf32>
    %c2 = arith.constant 2 : index
    %c0_23 = arith.constant 0 : index
    %17 = vector.load %arg3[%c2, %c0_23] : memref<9x4xf32, #tpu.memory_space<vmem>>, vector<1x4xf32>
    %18 = vector.shape_cast %17 : vector<1x4xf32> to vector<1x1x1x4xf32>
    %c0_24 = arith.constant 0 : index
    %c0_25 = arith.constant 0 : index
    %c2_26 = arith.constant 2 : index
    %c0_27 = arith.constant 0 : index
    %19 = vector.load %arg6[%c0_24, %c0_25, %c2_26, %c0_27] : memref<1x18x18x4xf32, #tpu.memory_space<vmem>>, vector<1x16x16x4xf32>
    %20 = vector.broadcast %18 : vector<1x1x1x4xf32> to vector<1x16x16x4xf32>
    %21 = arith.mulf %19, %20 : vector<1x16x16x4xf32>
    %22 = arith.addf %16, %21 : vector<1x16x16x4xf32>
    %c3 = arith.constant 3 : index
    %c0_28 = arith.constant 0 : index
    %23 = vector.load %arg3[%c3, %c0_28] : memref<9x4xf32, #tpu.memory_space<vmem>>, vector<1x4xf32>
    %24 = vector.shape_cast %23 : vector<1x4xf32> to vector<1x1x1x4xf32>
    %c0_29 = arith.constant 0 : index
    %c1_30 = arith.constant 1 : index
    %c0_31 = arith.constant 0 : index
    %c0_32 = arith.constant 0 : index
    %25 = vector.load %arg6[%c0_29, %c1_30, %c0_31, %c0_32] : memref<1x18x18x4xf32, #tpu.memory_space<vmem>>, vector<1x16x16x4xf32>
    %26 = vector.broadcast %24 : vector<1x1x1x4xf32> to vector<1x16x16x4xf32>
    %27 = arith.mulf %25, %26 : vector<1x16x16x4xf32>
    %28 = arith.addf %22, %27 : vector<1x16x16x4xf32>
    %c4 = arith.constant 4 : index
    %c0_33 = arith.constant 0 : index
    %29 = vector.load %arg3[%c4, %c0_33] : memref<9x4xf32, #tpu.memory_space<vmem>>, vector<1x4xf32>
    %30 = vector.shape_cast %29 : vector<1x4xf32> to vector<1x1x1x4xf32>
    %c0_34 = arith.constant 0 : index
    %c1_35 = arith.constant 1 : index
    %c1_36 = arith.constant 1 : index
    %c0_37 = arith.constant 0 : index
    %31 = vector.load %arg6[%c0_34, %c1_35, %c1_36, %c0_37] : memref<1x18x18x4xf32, #tpu.memory_space<vmem>>, vector<1x16x16x4xf32>
    %32 = vector.broadcast %30 : vector<1x1x1x4xf32> to vector<1x16x16x4xf32>
    %33 = arith.mulf %31, %32 : vector<1x16x16x4xf32>
    %34 = arith.addf %28, %33 : vector<1x16x16x4xf32>
    %c5 = arith.constant 5 : index
    %c0_38 = arith.constant 0 : index
    %35 = vector.load %arg3[%c5, %c0_38] : memref<9x4xf32, #tpu.memory_space<vmem>>, vector<1x4xf32>
    %36 = vector.shape_cast %35 : vector<1x4xf32> to vector<1x1x1x4xf32>
    %c0_39 = arith.constant 0 : index
    %c1_40 = arith.constant 1 : index
    %c2_41 = arith.constant 2 : index
    %c0_42 = arith.constant 0 : index
    %37 = vector.load %arg6[%c0_39, %c1_40, %c2_41, %c0_42] : memref<1x18x18x4xf32, #tpu.memory_space<vmem>>, vector<1x16x16x4xf32>
    %38 = vector.broadcast %36 : vector<1x1x1x4xf32> to vector<1x16x16x4xf32>
    %39 = arith.mulf %37, %38 : vector<1x16x16x4xf32>
    %40 = arith.addf %34, %39 : vector<1x16x16x4xf32>
    %c6 = arith.constant 6 : index
    %c0_43 = arith.constant 0 : index
    %41 = vector.load %arg3[%c6, %c0_43] : memref<9x4xf32, #tpu.memory_space<vmem>>, vector<1x4xf32>
    %42 = vector.shape_cast %41 : vector<1x4xf32> to vector<1x1x1x4xf32>
    %c0_44 = arith.constant 0 : index
    %c2_45 = arith.constant 2 : index
    %c0_46 = arith.constant 0 : index
    %c0_47 = arith.constant 0 : index
    %43 = vector.load %arg6[%c0_44, %c2_45, %c0_46, %c0_47] : memref<1x18x18x4xf32, #tpu.memory_space<vmem>>, vector<1x16x16x4xf32>
    %44 = vector.broadcast %42 : vector<1x1x1x4xf32> to vector<1x16x16x4xf32>
    %45 = arith.mulf %43, %44 : vector<1x16x16x4xf32>
    %46 = arith.addf %40, %45 : vector<1x16x16x4xf32>
    %c7 = arith.constant 7 : index
    %c0_48 = arith.constant 0 : index
    %47 = vector.load %arg3[%c7, %c0_48] : memref<9x4xf32, #tpu.memory_space<vmem>>, vector<1x4xf32>
    %48 = vector.shape_cast %47 : vector<1x4xf32> to vector<1x1x1x4xf32>
    %c0_49 = arith.constant 0 : index
    %c2_50 = arith.constant 2 : index
    %c1_51 = arith.constant 1 : index
    %c0_52 = arith.constant 0 : index
    %49 = vector.load %arg6[%c0_49, %c2_50, %c1_51, %c0_52] : memref<1x18x18x4xf32, #tpu.memory_space<vmem>>, vector<1x16x16x4xf32>
    %50 = vector.broadcast %48 : vector<1x1x1x4xf32> to vector<1x16x16x4xf32>
    %51 = arith.mulf %49, %50 : vector<1x16x16x4xf32>
    %52 = arith.addf %46, %51 : vector<1x16x16x4xf32>
    %c8 = arith.constant 8 : index
    %c0_53 = arith.constant 0 : index
    %53 = vector.load %arg3[%c8, %c0_53] : memref<9x4xf32, #tpu.memory_space<vmem>>, vector<1x4xf32>
    %54 = vector.shape_cast %53 : vector<1x4xf32> to vector<1x1x1x4xf32>
    %c0_54 = arith.constant 0 : index
    %c2_55 = arith.constant 2 : index
    %c2_56 = arith.constant 2 : index
    %c0_57 = arith.constant 0 : index
    %55 = vector.load %arg6[%c0_54, %c2_55, %c2_56, %c0_57] : memref<1x18x18x4xf32, #tpu.memory_space<vmem>>, vector<1x16x16x4xf32>
    %56 = vector.broadcast %54 : vector<1x1x1x4xf32> to vector<1x16x16x4xf32>
    %57 = arith.mulf %55, %56 : vector<1x16x16x4xf32>
    %58 = arith.addf %52, %57 : vector<1x16x16x4xf32>
    %c0_58 = arith.constant 0 : index
    %c0_59 = arith.constant 0 : index
    %59 = vector.load %arg4[%c0_58, %c0_59] : memref<1x4xf32, #tpu.memory_space<vmem>>, vector<1x4xf32>
    %60 = vector.shape_cast %59 : vector<1x4xf32> to vector<1x1x1x4xf32>
    %61 = vector.broadcast %60 : vector<1x1x1x4xf32> to vector<1x16x16x4xf32>
    %62 = arith.addf %58, %61 : vector<1x16x16x4xf32>
    %c0_60 = arith.constant 0 : index
    %c0_61 = arith.constant 0 : index
    %c0_62 = arith.constant 0 : index
    %c0_63 = arith.constant 0 : index
    %63 = vector.load %arg5[%c0_60, %c0_61, %c0_62, %c0_63] : memref<1x16x16x4xf32, #tpu.memory_space<vmem>>, vector<1x16x16x4xf32>
    tpu.vector_store %arg5[%c0_60, %c0_61, %c0_62, %c0_63], %62 {strides = array<i32>} : memref<1x16x16x4xf32, #tpu.memory_space<vmem>>, vector<1x16x16x4xf32>,
    return
  }
  func.func @transform_0(%arg0: i32, %arg1: i32) -> (i32, i32, i32, i32) {
    %c0_i32 = arith.constant 0 : i32
    %c0_i32_0 = arith.constant 0 : i32
    %c0_i32_1 = arith.constant 0 : i32
    return %arg0, %c0_i32, %c0_i32_0, %arg1 : i32, i32, i32, i32
  }
  func.func @transform_1(%arg0: i32, %arg1: i32) -> (i32, i32) {
    %c0_i32 = arith.constant 0 : i32
    %c0_i32_0 = arith.constant 0 : i32
    return %c0_i32, %arg1 : i32, i32
  }
  func.func @transform_2(%arg0: i32, %arg1: i32) -> (i32, i32) {
    %c0_i32 = arith.constant 0 : i32
    %c0_i32_0 = arith.constant 0 : i32
    return %c0_i32, %arg1 : i32, i32
  }
  func.func @transform_3(%arg0: i32, %arg1: i32) -> (i32, i32, i32, i32) {
    %c0_i32 = arith.constant 0 : i32
    %c0_i32_0 = arith.constant 0 : i32
    %c0_i32_1 = arith.constant 0 : i32
    return %arg0, %c0_i32, %c0_i32_0, %arg1 : i32, i32, i32, i32
  }
}

module attributes {stable_mosaic.version = 11 : i64} {
  func.func @kernel(%arg0: i32, %arg1: i32, %arg2: memref<1x8x8x16xf32, #tpu.memory_space<vmem>>, %arg3: memref<9x16xf32, #tpu.memory_space<vmem>>, %arg4: memref<1x16xf32, #tpu.memory_space<vmem>>, %arg5: memref<1x8x8x16xf32, #tpu.memory_space<vmem>>, %arg6: memref<1x10x10x16xf32, #tpu.memory_space<vmem>>) attributes {dimension_semantics = [#tpu.dimension_semantics<parallel>, #tpu.dimension_semantics<parallel>], iteration_bounds = array<i64: 2, 1>, scalar_prefetch = 0 : i64, scratch_operands = 1 : i64, tpu.core_type = #tpu.core_type<tc>, window_params = [{transform_indices = @transform_0, window_bounds = array<i64: 1, 8, 8, 16>}, {transform_indices = @transform_1, window_bounds = array<i64: 9, 16>}, {transform_indices = @transform_2, window_bounds = array<i64: 1, 16>}, {transform_indices = @transform_3, window_bounds = array<i64: 1, 8, 8, 16>}]} {
    %cst = arith.constant 0.000000e+00 : f32
    %0 = vector.broadcast %cst : f32 to vector<1x10x10x16xf32>
    %c0 = arith.constant 0 : index
    %c0_0 = arith.constant 0 : index
    %c0_1 = arith.constant 0 : index
    %c0_2 = arith.constant 0 : index
    %1 = vector.load %arg6[%c0, %c0_0, %c0_1, %c0_2] : memref<1x10x10x16xf32, #tpu.memory_space<vmem>>, vector<1x10x10x16xf32>
    tpu.vector_store %arg6[%c0, %c0_0, %c0_1, %c0_2], %0 {strides = array<i32>} : memref<1x10x10x16xf32, #tpu.memory_space<vmem>>, vector<1x10x10x16xf32>,
    %c0_3 = arith.constant 0 : index
    %c0_4 = arith.constant 0 : index
    %c0_5 = arith.constant 0 : index
    %c0_6 = arith.constant 0 : index
    %2 = vector.load %arg2[%c0_3, %c0_4, %c0_5, %c0_6] : memref<1x8x8x16xf32, #tpu.memory_space<vmem>>, vector<1x8x8x16xf32>
    %c0_7 = arith.constant 0 : index
    %c1 = arith.constant 1 : index
    %c1_8 = arith.constant 1 : index
    %c0_9 = arith.constant 0 : index
    %3 = vector.load %arg6[%c0_7, %c1, %c1_8, %c0_9] : memref<1x10x10x16xf32, #tpu.memory_space<vmem>>, vector<1x8x8x16xf32>
    tpu.vector_store %arg6[%c0_7, %c1, %c1_8, %c0_9], %2 {strides = array<i32>} : memref<1x10x10x16xf32, #tpu.memory_space<vmem>>, vector<1x8x8x16xf32>,
    %cst_10 = arith.constant 0.000000e+00 : f32
    %4 = vector.broadcast %cst_10 : f32 to vector<1x8x8x16xf32>
    %c0_11 = arith.constant 0 : index
    %c0_12 = arith.constant 0 : index
    %5 = vector.load %arg3[%c0_11, %c0_12] : memref<9x16xf32, #tpu.memory_space<vmem>>, vector<1x16xf32>
    %6 = vector.shape_cast %5 : vector<1x16xf32> to vector<1x1x1x16xf32>
    %c0_13 = arith.constant 0 : index
    %c0_14 = arith.constant 0 : index
    %c0_15 = arith.constant 0 : index
    %c0_16 = arith.constant 0 : index
    %7 = vector.load %arg6[%c0_13, %c0_14, %c0_15, %c0_16] : memref<1x10x10x16xf32, #tpu.memory_space<vmem>>, vector<1x8x8x16xf32>
    %8 = vector.broadcast %6 : vector<1x1x1x16xf32> to vector<1x8x8x16xf32>
    %9 = arith.mulf %7, %8 : vector<1x8x8x16xf32>
    %10 = arith.addf %4, %9 : vector<1x8x8x16xf32>
    %c1_17 = arith.constant 1 : index
    %c0_18 = arith.constant 0 : index
    %11 = vector.load %arg3[%c1_17, %c0_18] : memref<9x16xf32, #tpu.memory_space<vmem>>, vector<1x16xf32>
    %12 = vector.shape_cast %11 : vector<1x16xf32> to vector<1x1x1x16xf32>
    %c0_19 = arith.constant 0 : index
    %c0_20 = arith.constant 0 : index
    %c1_21 = arith.constant 1 : index
    %c0_22 = arith.constant 0 : index
    %13 = vector.load %arg6[%c0_19, %c0_20, %c1_21, %c0_22] : memref<1x10x10x16xf32, #tpu.memory_space<vmem>>, vector<1x8x8x16xf32>
    %14 = vector.broadcast %12 : vector<1x1x1x16xf32> to vector<1x8x8x16xf32>
    %15 = arith.mulf %13, %14 : vector<1x8x8x16xf32>
    %16 = arith.addf %10, %15 : vector<1x8x8x16xf32>
    %c2 = arith.constant 2 : index
    %c0_23 = arith.constant 0 : index
    %17 = vector.load %arg3[%c2, %c0_23] : memref<9x16xf32, #tpu.memory_space<vmem>>, vector<1x16xf32>
    %18 = vector.shape_cast %17 : vector<1x16xf32> to vector<1x1x1x16xf32>
    %c0_24 = arith.constant 0 : index
    %c0_25 = arith.constant 0 : index
    %c2_26 = arith.constant 2 : index
    %c0_27 = arith.constant 0 : index
    %19 = vector.load %arg6[%c0_24, %c0_25, %c2_26, %c0_27] : memref<1x10x10x16xf32, #tpu.memory_space<vmem>>, vector<1x8x8x16xf32>
    %20 = vector.broadcast %18 : vector<1x1x1x16xf32> to vector<1x8x8x16xf32>
    %21 = arith.mulf %19, %20 : vector<1x8x8x16xf32>
    %22 = arith.addf %16, %21 : vector<1x8x8x16xf32>
    %c3 = arith.constant 3 : index
    %c0_28 = arith.constant 0 : index
    %23 = vector.load %arg3[%c3, %c0_28] : memref<9x16xf32, #tpu.memory_space<vmem>>, vector<1x16xf32>
    %24 = vector.shape_cast %23 : vector<1x16xf32> to vector<1x1x1x16xf32>
    %c0_29 = arith.constant 0 : index
    %c1_30 = arith.constant 1 : index
    %c0_31 = arith.constant 0 : index
    %c0_32 = arith.constant 0 : index
    %25 = vector.load %arg6[%c0_29, %c1_30, %c0_31, %c0_32] : memref<1x10x10x16xf32, #tpu.memory_space<vmem>>, vector<1x8x8x16xf32>
    %26 = vector.broadcast %24 : vector<1x1x1x16xf32> to vector<1x8x8x16xf32>
    %27 = arith.mulf %25, %26 : vector<1x8x8x16xf32>
    %28 = arith.addf %22, %27 : vector<1x8x8x16xf32>
    %c4 = arith.constant 4 : index
    %c0_33 = arith.constant 0 : index
    %29 = vector.load %arg3[%c4, %c0_33] : memref<9x16xf32, #tpu.memory_space<vmem>>, vector<1x16xf32>
    %30 = vector.shape_cast %29 : vector<1x16xf32> to vector<1x1x1x16xf32>
    %c0_34 = arith.constant 0 : index
    %c1_35 = arith.constant 1 : index
    %c1_36 = arith.constant 1 : index
    %c0_37 = arith.constant 0 : index
    %31 = vector.load %arg6[%c0_34, %c1_35, %c1_36, %c0_37] : memref<1x10x10x16xf32, #tpu.memory_space<vmem>>, vector<1x8x8x16xf32>
    %32 = vector.broadcast %30 : vector<1x1x1x16xf32> to vector<1x8x8x16xf32>
    %33 = arith.mulf %31, %32 : vector<1x8x8x16xf32>
    %34 = arith.addf %28, %33 : vector<1x8x8x16xf32>
    %c5 = arith.constant 5 : index
    %c0_38 = arith.constant 0 : index
    %35 = vector.load %arg3[%c5, %c0_38] : memref<9x16xf32, #tpu.memory_space<vmem>>, vector<1x16xf32>
    %36 = vector.shape_cast %35 : vector<1x16xf32> to vector<1x1x1x16xf32>
    %c0_39 = arith.constant 0 : index
    %c1_40 = arith.constant 1 : index
    %c2_41 = arith.constant 2 : index
    %c0_42 = arith.constant 0 : index
    %37 = vector.load %arg6[%c0_39, %c1_40, %c2_41, %c0_42] : memref<1x10x10x16xf32, #tpu.memory_space<vmem>>, vector<1x8x8x16xf32>
    %38 = vector.broadcast %36 : vector<1x1x1x16xf32> to vector<1x8x8x16xf32>
    %39 = arith.mulf %37, %38 : vector<1x8x8x16xf32>
    %40 = arith.addf %34, %39 : vector<1x8x8x16xf32>
    %c6 = arith.constant 6 : index
    %c0_43 = arith.constant 0 : index
    %41 = vector.load %arg3[%c6, %c0_43] : memref<9x16xf32, #tpu.memory_space<vmem>>, vector<1x16xf32>
    %42 = vector.shape_cast %41 : vector<1x16xf32> to vector<1x1x1x16xf32>
    %c0_44 = arith.constant 0 : index
    %c2_45 = arith.constant 2 : index
    %c0_46 = arith.constant 0 : index
    %c0_47 = arith.constant 0 : index
    %43 = vector.load %arg6[%c0_44, %c2_45, %c0_46, %c0_47] : memref<1x10x10x16xf32, #tpu.memory_space<vmem>>, vector<1x8x8x16xf32>
    %44 = vector.broadcast %42 : vector<1x1x1x16xf32> to vector<1x8x8x16xf32>
    %45 = arith.mulf %43, %44 : vector<1x8x8x16xf32>
    %46 = arith.addf %40, %45 : vector<1x8x8x16xf32>
    %c7 = arith.constant 7 : index
    %c0_48 = arith.constant 0 : index
    %47 = vector.load %arg3[%c7, %c0_48] : memref<9x16xf32, #tpu.memory_space<vmem>>, vector<1x16xf32>
    %48 = vector.shape_cast %47 : vector<1x16xf32> to vector<1x1x1x16xf32>
    %c0_49 = arith.constant 0 : index
    %c2_50 = arith.constant 2 : index
    %c1_51 = arith.constant 1 : index
    %c0_52 = arith.constant 0 : index
    %49 = vector.load %arg6[%c0_49, %c2_50, %c1_51, %c0_52] : memref<1x10x10x16xf32, #tpu.memory_space<vmem>>, vector<1x8x8x16xf32>
    %50 = vector.broadcast %48 : vector<1x1x1x16xf32> to vector<1x8x8x16xf32>
    %51 = arith.mulf %49, %50 : vector<1x8x8x16xf32>
    %52 = arith.addf %46, %51 : vector<1x8x8x16xf32>
    %c8 = arith.constant 8 : index
    %c0_53 = arith.constant 0 : index
    %53 = vector.load %arg3[%c8, %c0_53] : memref<9x16xf32, #tpu.memory_space<vmem>>, vector<1x16xf32>
    %54 = vector.shape_cast %53 : vector<1x16xf32> to vector<1x1x1x16xf32>
    %c0_54 = arith.constant 0 : index
    %c2_55 = arith.constant 2 : index
    %c2_56 = arith.constant 2 : index
    %c0_57 = arith.constant 0 : index
    %55 = vector.load %arg6[%c0_54, %c2_55, %c2_56, %c0_57] : memref<1x10x10x16xf32, #tpu.memory_space<vmem>>, vector<1x8x8x16xf32>
    %56 = vector.broadcast %54 : vector<1x1x1x16xf32> to vector<1x8x8x16xf32>
    %57 = arith.mulf %55, %56 : vector<1x8x8x16xf32>
    %58 = arith.addf %52, %57 : vector<1x8x8x16xf32>
    %c0_58 = arith.constant 0 : index
    %c0_59 = arith.constant 0 : index
    %59 = vector.load %arg4[%c0_58, %c0_59] : memref<1x16xf32, #tpu.memory_space<vmem>>, vector<1x16xf32>
    %60 = vector.shape_cast %59 : vector<1x16xf32> to vector<1x1x1x16xf32>
    %61 = vector.broadcast %60 : vector<1x1x1x16xf32> to vector<1x8x8x16xf32>
    %62 = arith.addf %58, %61 : vector<1x8x8x16xf32>
    %c0_60 = arith.constant 0 : index
    %c0_61 = arith.constant 0 : index
    %c0_62 = arith.constant 0 : index
    %c0_63 = arith.constant 0 : index
    %63 = vector.load %arg5[%c0_60, %c0_61, %c0_62, %c0_63] : memref<1x8x8x16xf32, #tpu.memory_space<vmem>>, vector<1x8x8x16xf32>
    tpu.vector_store %arg5[%c0_60, %c0_61, %c0_62, %c0_63], %62 {strides = array<i32>} : memref<1x8x8x16xf32, #tpu.memory_space<vmem>>, vector<1x8x8x16xf32>,
    return
  }
  func.func @transform_0(%arg0: i32, %arg1: i32) -> (i32, i32, i32, i32) {
    %c0_i32 = arith.constant 0 : i32
    %c0_i32_0 = arith.constant 0 : i32
    %c0_i32_1 = arith.constant 0 : i32
    return %arg0, %c0_i32, %c0_i32_0, %arg1 : i32, i32, i32, i32
  }
  func.func @transform_1(%arg0: i32, %arg1: i32) -> (i32, i32) {
    %c0_i32 = arith.constant 0 : i32
    %c0_i32_0 = arith.constant 0 : i32
    return %c0_i32, %arg1 : i32, i32
  }
  func.func @transform_2(%arg0: i32, %arg1: i32) -> (i32, i32) {
    %c0_i32 = arith.constant 0 : i32
    %c0_i32_0 = arith.constant 0 : i32
    return %c0_i32, %arg1 : i32, i32
  }
  func.func @transform_3(%arg0: i32, %arg1: i32) -> (i32, i32, i32, i32) {
    %c0_i32 = arith.constant 0 : i32
    %c0_i32_0 = arith.constant 0 : i32
    %c0_i32_1 = arith.constant 0 : i32
    return %arg0, %c0_i32, %c0_i32_0, %arg1 : i32, i32, i32, i32
  }
}

module attributes {stable_mosaic.version = 11 : i64} {
  func.func @kernel(%arg0: i32, %arg1: i32, %arg2: memref<1x4x4x16xf32, #tpu.memory_space<vmem>>, %arg3: memref<9x16xf32, #tpu.memory_space<vmem>>, %arg4: memref<1x16xf32, #tpu.memory_space<vmem>>, %arg5: memref<1x4x4x16xf32, #tpu.memory_space<vmem>>, %arg6: memref<1x6x6x16xf32, #tpu.memory_space<vmem>>) attributes {dimension_semantics = [#tpu.dimension_semantics<parallel>, #tpu.dimension_semantics<parallel>], iteration_bounds = array<i64: 2, 1>, scalar_prefetch = 0 : i64, scratch_operands = 1 : i64, tpu.core_type = #tpu.core_type<tc>, window_params = [{transform_indices = @transform_0, window_bounds = array<i64: 1, 4, 4, 16>}, {transform_indices = @transform_1, window_bounds = array<i64: 9, 16>}, {transform_indices = @transform_2, window_bounds = array<i64: 1, 16>}, {transform_indices = @transform_3, window_bounds = array<i64: 1, 4, 4, 16>}]} {
    %cst = arith.constant 0.000000e+00 : f32
    %0 = vector.broadcast %cst : f32 to vector<1x6x6x16xf32>
    %c0 = arith.constant 0 : index
    %c0_0 = arith.constant 0 : index
    %c0_1 = arith.constant 0 : index
    %c0_2 = arith.constant 0 : index
    %1 = vector.load %arg6[%c0, %c0_0, %c0_1, %c0_2] : memref<1x6x6x16xf32, #tpu.memory_space<vmem>>, vector<1x6x6x16xf32>
    tpu.vector_store %arg6[%c0, %c0_0, %c0_1, %c0_2], %0 {strides = array<i32>} : memref<1x6x6x16xf32, #tpu.memory_space<vmem>>, vector<1x6x6x16xf32>,
    %c0_3 = arith.constant 0 : index
    %c0_4 = arith.constant 0 : index
    %c0_5 = arith.constant 0 : index
    %c0_6 = arith.constant 0 : index
    %2 = vector.load %arg2[%c0_3, %c0_4, %c0_5, %c0_6] : memref<1x4x4x16xf32, #tpu.memory_space<vmem>>, vector<1x4x4x16xf32>
    %c0_7 = arith.constant 0 : index
    %c1 = arith.constant 1 : index
    %c1_8 = arith.constant 1 : index
    %c0_9 = arith.constant 0 : index
    %3 = vector.load %arg6[%c0_7, %c1, %c1_8, %c0_9] : memref<1x6x6x16xf32, #tpu.memory_space<vmem>>, vector<1x4x4x16xf32>
    tpu.vector_store %arg6[%c0_7, %c1, %c1_8, %c0_9], %2 {strides = array<i32>} : memref<1x6x6x16xf32, #tpu.memory_space<vmem>>, vector<1x4x4x16xf32>,
    %cst_10 = arith.constant 0.000000e+00 : f32
    %4 = vector.broadcast %cst_10 : f32 to vector<1x4x4x16xf32>
    %c0_11 = arith.constant 0 : index
    %c0_12 = arith.constant 0 : index
    %5 = vector.load %arg3[%c0_11, %c0_12] : memref<9x16xf32, #tpu.memory_space<vmem>>, vector<1x16xf32>
    %6 = vector.shape_cast %5 : vector<1x16xf32> to vector<1x1x1x16xf32>
    %c0_13 = arith.constant 0 : index
    %c0_14 = arith.constant 0 : index
    %c0_15 = arith.constant 0 : index
    %c0_16 = arith.constant 0 : index
    %7 = vector.load %arg6[%c0_13, %c0_14, %c0_15, %c0_16] : memref<1x6x6x16xf32, #tpu.memory_space<vmem>>, vector<1x4x4x16xf32>
    %8 = vector.broadcast %6 : vector<1x1x1x16xf32> to vector<1x4x4x16xf32>
    %9 = arith.mulf %7, %8 : vector<1x4x4x16xf32>
    %10 = arith.addf %4, %9 : vector<1x4x4x16xf32>
    %c1_17 = arith.constant 1 : index
    %c0_18 = arith.constant 0 : index
    %11 = vector.load %arg3[%c1_17, %c0_18] : memref<9x16xf32, #tpu.memory_space<vmem>>, vector<1x16xf32>
    %12 = vector.shape_cast %11 : vector<1x16xf32> to vector<1x1x1x16xf32>
    %c0_19 = arith.constant 0 : index
    %c0_20 = arith.constant 0 : index
    %c1_21 = arith.constant 1 : index
    %c0_22 = arith.constant 0 : index
    %13 = vector.load %arg6[%c0_19, %c0_20, %c1_21, %c0_22] : memref<1x6x6x16xf32, #tpu.memory_space<vmem>>, vector<1x4x4x16xf32>
    %14 = vector.broadcast %12 : vector<1x1x1x16xf32> to vector<1x4x4x16xf32>
    %15 = arith.mulf %13, %14 : vector<1x4x4x16xf32>
    %16 = arith.addf %10, %15 : vector<1x4x4x16xf32>
    %c2 = arith.constant 2 : index
    %c0_23 = arith.constant 0 : index
    %17 = vector.load %arg3[%c2, %c0_23] : memref<9x16xf32, #tpu.memory_space<vmem>>, vector<1x16xf32>
    %18 = vector.shape_cast %17 : vector<1x16xf32> to vector<1x1x1x16xf32>
    %c0_24 = arith.constant 0 : index
    %c0_25 = arith.constant 0 : index
    %c2_26 = arith.constant 2 : index
    %c0_27 = arith.constant 0 : index
    %19 = vector.load %arg6[%c0_24, %c0_25, %c2_26, %c0_27] : memref<1x6x6x16xf32, #tpu.memory_space<vmem>>, vector<1x4x4x16xf32>
    %20 = vector.broadcast %18 : vector<1x1x1x16xf32> to vector<1x4x4x16xf32>
    %21 = arith.mulf %19, %20 : vector<1x4x4x16xf32>
    %22 = arith.addf %16, %21 : vector<1x4x4x16xf32>
    %c3 = arith.constant 3 : index
    %c0_28 = arith.constant 0 : index
    %23 = vector.load %arg3[%c3, %c0_28] : memref<9x16xf32, #tpu.memory_space<vmem>>, vector<1x16xf32>
    %24 = vector.shape_cast %23 : vector<1x16xf32> to vector<1x1x1x16xf32>
    %c0_29 = arith.constant 0 : index
    %c1_30 = arith.constant 1 : index
    %c0_31 = arith.constant 0 : index
    %c0_32 = arith.constant 0 : index
    %25 = vector.load %arg6[%c0_29, %c1_30, %c0_31, %c0_32] : memref<1x6x6x16xf32, #tpu.memory_space<vmem>>, vector<1x4x4x16xf32>
    %26 = vector.broadcast %24 : vector<1x1x1x16xf32> to vector<1x4x4x16xf32>
    %27 = arith.mulf %25, %26 : vector<1x4x4x16xf32>
    %28 = arith.addf %22, %27 : vector<1x4x4x16xf32>
    %c4 = arith.constant 4 : index
    %c0_33 = arith.constant 0 : index
    %29 = vector.load %arg3[%c4, %c0_33] : memref<9x16xf32, #tpu.memory_space<vmem>>, vector<1x16xf32>
    %30 = vector.shape_cast %29 : vector<1x16xf32> to vector<1x1x1x16xf32>
    %c0_34 = arith.constant 0 : index
    %c1_35 = arith.constant 1 : index
    %c1_36 = arith.constant 1 : index
    %c0_37 = arith.constant 0 : index
    %31 = vector.load %arg6[%c0_34, %c1_35, %c1_36, %c0_37] : memref<1x6x6x16xf32, #tpu.memory_space<vmem>>, vector<1x4x4x16xf32>
    %32 = vector.broadcast %30 : vector<1x1x1x16xf32> to vector<1x4x4x16xf32>
    %33 = arith.mulf %31, %32 : vector<1x4x4x16xf32>
    %34 = arith.addf %28, %33 : vector<1x4x4x16xf32>
    %c5 = arith.constant 5 : index
    %c0_38 = arith.constant 0 : index
    %35 = vector.load %arg3[%c5, %c0_38] : memref<9x16xf32, #tpu.memory_space<vmem>>, vector<1x16xf32>
    %36 = vector.shape_cast %35 : vector<1x16xf32> to vector<1x1x1x16xf32>
    %c0_39 = arith.constant 0 : index
    %c1_40 = arith.constant 1 : index
    %c2_41 = arith.constant 2 : index
    %c0_42 = arith.constant 0 : index
    %37 = vector.load %arg6[%c0_39, %c1_40, %c2_41, %c0_42] : memref<1x6x6x16xf32, #tpu.memory_space<vmem>>, vector<1x4x4x16xf32>
    %38 = vector.broadcast %36 : vector<1x1x1x16xf32> to vector<1x4x4x16xf32>
    %39 = arith.mulf %37, %38 : vector<1x4x4x16xf32>
    %40 = arith.addf %34, %39 : vector<1x4x4x16xf32>
    %c6 = arith.constant 6 : index
    %c0_43 = arith.constant 0 : index
    %41 = vector.load %arg3[%c6, %c0_43] : memref<9x16xf32, #tpu.memory_space<vmem>>, vector<1x16xf32>
    %42 = vector.shape_cast %41 : vector<1x16xf32> to vector<1x1x1x16xf32>
    %c0_44 = arith.constant 0 : index
    %c2_45 = arith.constant 2 : index
    %c0_46 = arith.constant 0 : index
    %c0_47 = arith.constant 0 : index
    %43 = vector.load %arg6[%c0_44, %c2_45, %c0_46, %c0_47] : memref<1x6x6x16xf32, #tpu.memory_space<vmem>>, vector<1x4x4x16xf32>
    %44 = vector.broadcast %42 : vector<1x1x1x16xf32> to vector<1x4x4x16xf32>
    %45 = arith.mulf %43, %44 : vector<1x4x4x16xf32>
    %46 = arith.addf %40, %45 : vector<1x4x4x16xf32>
    %c7 = arith.constant 7 : index
    %c0_48 = arith.constant 0 : index
    %47 = vector.load %arg3[%c7, %c0_48] : memref<9x16xf32, #tpu.memory_space<vmem>>, vector<1x16xf32>
    %48 = vector.shape_cast %47 : vector<1x16xf32> to vector<1x1x1x16xf32>
    %c0_49 = arith.constant 0 : index
    %c2_50 = arith.constant 2 : index
    %c1_51 = arith.constant 1 : index
    %c0_52 = arith.constant 0 : index
    %49 = vector.load %arg6[%c0_49, %c2_50, %c1_51, %c0_52] : memref<1x6x6x16xf32, #tpu.memory_space<vmem>>, vector<1x4x4x16xf32>
    %50 = vector.broadcast %48 : vector<1x1x1x16xf32> to vector<1x4x4x16xf32>
    %51 = arith.mulf %49, %50 : vector<1x4x4x16xf32>
    %52 = arith.addf %46, %51 : vector<1x4x4x16xf32>
    %c8 = arith.constant 8 : index
    %c0_53 = arith.constant 0 : index
    %53 = vector.load %arg3[%c8, %c0_53] : memref<9x16xf32, #tpu.memory_space<vmem>>, vector<1x16xf32>
    %54 = vector.shape_cast %53 : vector<1x16xf32> to vector<1x1x1x16xf32>
    %c0_54 = arith.constant 0 : index
    %c2_55 = arith.constant 2 : index
    %c2_56 = arith.constant 2 : index
    %c0_57 = arith.constant 0 : index
    %55 = vector.load %arg6[%c0_54, %c2_55, %c2_56, %c0_57] : memref<1x6x6x16xf32, #tpu.memory_space<vmem>>, vector<1x4x4x16xf32>
    %56 = vector.broadcast %54 : vector<1x1x1x16xf32> to vector<1x4x4x16xf32>
    %57 = arith.mulf %55, %56 : vector<1x4x4x16xf32>
    %58 = arith.addf %52, %57 : vector<1x4x4x16xf32>
    %c0_58 = arith.constant 0 : index
    %c0_59 = arith.constant 0 : index
    %59 = vector.load %arg4[%c0_58, %c0_59] : memref<1x16xf32, #tpu.memory_space<vmem>>, vector<1x16xf32>
    %60 = vector.shape_cast %59 : vector<1x16xf32> to vector<1x1x1x16xf32>
    %61 = vector.broadcast %60 : vector<1x1x1x16xf32> to vector<1x4x4x16xf32>
    %62 = arith.addf %58, %61 : vector<1x4x4x16xf32>
    %c0_60 = arith.constant 0 : index
    %c0_61 = arith.constant 0 : index
    %c0_62 = arith.constant 0 : index
    %c0_63 = arith.constant 0 : index
    %63 = vector.load %arg5[%c0_60, %c0_61, %c0_62, %c0_63] : memref<1x4x4x16xf32, #tpu.memory_space<vmem>>, vector<1x4x4x16xf32>
    tpu.vector_store %arg5[%c0_60, %c0_61, %c0_62, %c0_63], %62 {strides = array<i32>} : memref<1x4x4x16xf32, #tpu.memory_space<vmem>>, vector<1x4x4x16xf32>,
    return
  }
  func.func @transform_0(%arg0: i32, %arg1: i32) -> (i32, i32, i32, i32) {
    %c0_i32 = arith.constant 0 : i32
    %c0_i32_0 = arith.constant 0 : i32
    %c0_i32_1 = arith.constant 0 : i32
    return %arg0, %c0_i32, %c0_i32_0, %arg1 : i32, i32, i32, i32
  }
  func.func @transform_1(%arg0: i32, %arg1: i32) -> (i32, i32) {
    %c0_i32 = arith.constant 0 : i32
    %c0_i32_0 = arith.constant 0 : i32
    return %c0_i32, %arg1 : i32, i32
  }
  func.func @transform_2(%arg0: i32, %arg1: i32) -> (i32, i32) {
    %c0_i32 = arith.constant 0 : i32
    %c0_i32_0 = arith.constant 0 : i32
    return %c0_i32, %arg1 : i32, i32
  }
  func.func @transform_3(%arg0: i32, %arg1: i32) -> (i32, i32, i32, i32) {
    %c0_i32 = arith.constant 0 : i32
    %c0_i32_0 = arith.constant 0 : i32
    %c0_i32_1 = arith.constant 0 : i32
    return %arg0, %c0_i32, %c0_i32_0, %arg1 : i32, i32, i32, i32
  }
}

</mosaic_0001>

<bundles_post_ra>
// kernel: wtconv_forward_pallas.4
= control target key start
LH: loop header
LB: loop body
LE: loop exit
PB: predicated region body
PF: predicated region fallthrough
CT: control target
= control target key end

     0   :  { %s733_s12 = smov 0   ;;  %s735_s13 = smov 0   ;;  %s949_s0 = inlined_call_operand.vmem [shape: f32[2,8,8,16], index: 0, kind: input, shape index: {}]   ;;  %s950_s1 = inlined_call_operand.vmem [shape: f32[9,16], index: 1, kind: input, shape index: {}]   ;;  %s951_s2 = inlined_call_operand.vmem [shape: f32[1,16], index: 2, kind: input, shape index: {}]   ;;  %s952_s3 = inlined_call_operand.vmem [shape: f32[2,8,8,16], index: 3, kind: output, shape index: {}]  }
   0x1   :  { %s737_s14 = smov 0  }
   0x2 LB: > { %s25_s15 = sadd.s32 1, %s706_s13  ;;  %p644_p0 = scmp.ge.s32.totalorder %s710_s14, 1  ;;  %s710_s14 = sphi %s737_s14, %s13_s14   ;;  %s706_s13 = sphi %s735_s13, %s954_s13   ;;  %s702_s12 = sphi %s733_s12, %s953_s12  }
   0x3   : > { %p27_p1 = scmp.ge.s32.totalorder %s25_s15, 2  ;;  %p173_p2 = scmp.lt.s32.totalorder %s710_s14, 3 }
   0x5   : > { %s956_s15 = smov (%p27_p1, %s25_s15), 0  ;;  %p174_p3 = pnand %p644_p0, %p173_p2 }
   0x6   : > { %p210_p4 = scmp.lt.s32.totalorder (!%p174_p3), %s702_s12, 1 }
   0x7   : > { %177 = sbr.rel (%p174_p3) target bundleno = 87 (0x57), region = 32 }
   0xc   : > { %vm233_vm0 = vcmask 130048   ;;  %v712_v0 = vmov 0.0   ;;  %vm235_vm1 = vcmask 123904   ;;  %s958_s12 = smov (!%p210_p4, %s702_s12), 1  ;;  %v777_v1 = vld [vmem:[%s950_s1] ss:$0 sm:$0xff] }
   0xd   : > { %234 = vst.msk [vmem:[#allocation2] sm:$0xff] %vm233_vm0, %v712_v0  ;;  %s651_s16 = sshll.u32 %s958_s12, 6  ;;  %v782_v2 = vld [vmem:[%s950_s1 + $0x1] ss:$0 sm:$0xff]  ;;  %v793_v9 = vld [vmem:[%s950_s1 + $0x2] ss:$0 sm:$0xff] }
   0xe   : > { %237 = vst.msk [vmem:[#allocation2 + $0x10] sm:$0xff] %vm233_vm0, %v712_v0  ;;  %s217_s19 = scalar_lea.vmem %s949_s0, %s651_s16  ;;  %v805_v19 = vld [vmem:[%s950_s1 + $0x3] ss:$0 sm:$0xff]  ;;  %v812_v21 = vld [vmem:[%s950_s1 + $0x4] ss:$0 sm:$0xff]  ;;  %s873_s20 = scalar_lea.vmem %s952_s3, %s651_s16 }
   0xf   : > { %239 = vst.msk [vmem:[#allocation2 + $0x20] sm:$0xff] %vm233_vm0, %v712_v0  ;;  %v255_v4 = vld [vmem:[%s217_s19] sm:$0xff]  ;;  %v256_v6 = vld [vmem:[%s217_s19 + $0x8] sm:$0xff]  ;;  %v257_v10 = vld [vmem:[%s217_s19 + $0x10] sm:$0xff] }
  0x10   : > { %241 = vst.msk [vmem:[#allocation2 + $0x30] sm:$0xff] %vm233_vm0, %v712_v0  ;;  %v258_v12 = vld [vmem:[%s217_s19 + $0x18] sm:$0xff]  ;;  %v259_v13 = vld [vmem:[%s217_s19 + $0x20] sm:$0xff]  ;;  %v260_v14 = vld [vmem:[%s217_s19 + $0x28] sm:$0xff] }
  0x11   : > { %243 = vst.msk [vmem:[#allocation2 + $0x40] sm:$0xff] %vm233_vm0, %v712_v0  ;;  %v261_v17 = vld [vmem:[%s217_s19 + $0x30] sm:$0xff]  ;;  %v262_v18 = vld [vmem:[%s217_s19 + $0x38] sm:$0xff]  ;;  %v817_v22 = vld [vmem:[%s950_s1 + $0x5] ss:$0 sm:$0xff] }
  0x12   : > { %245 = vst.msk [vmem:[#allocation2 + $0x50] sm:$0xff] %vm233_vm0, %v712_v0  ;;  %v823_v25 = vld [vmem:[%s950_s1 + $0x6] ss:$0 sm:$0xff]  ;;  %v829_v29 = vld [vmem:[%s950_s1 + $0x7] ss:$0 sm:$0xff] }
  0x13   : > { %247 = vst.msk [vmem:[#allocation2 + $0x60] sm:$0xff] %vm233_vm0, %v712_v0  ;;  %v835_v32 = vld [vmem:[%s950_s1 + $0x8] ss:$0 sm:$0xff] }
  0x14   : > { %249 = vst.msk [vmem:[#allocation2 + $0x70] sm:$0xff] %vm233_vm0, %v712_v0  ;;  %v273_v3 = vld [vmem:[#allocation2] sm:$0xff] }
  0x15   : > { %251 = vst.msk [vmem:[#allocation2 + $0x80] sm:$0xff] %vm233_vm0, %v712_v0  ;;  %v282_v7 = vmul.f32 %v777_v1, %v273_v3 }
  0x16   : > { %253 = vst.msk [vmem:[#allocation2 + $0x90] sm:$0xff] %vm233_vm0, %v712_v0 }
  0x17   : > { %236 = vst.msk [vmem:[#allocation2 + $0x8] sm:$0x3] %vm235_vm1, %v712_v0 }
  0x18   : > { %238 = vst.msk [vmem:[#allocation2 + $0x18] sm:$0x3] %vm235_vm1, %v712_v0 }
  0x19   : > { %240 = vst.msk [vmem:[#allocation2 + $0x28] sm:$0x3] %vm235_vm1, %v712_v0 }
  0x1a   : > { %242 = vst.msk [vmem:[#allocation2 + $0x38] sm:$0x3] %vm235_vm1, %v712_v0 }
  0x1b   : > { %244 = vst.msk [vmem:[#allocation2 + $0x48] sm:$0x3] %vm235_vm1, %v712_v0 }
  0x1c   : > { %246 = vst.msk [vmem:[#allocation2 + $0x58] sm:$0x3] %vm235_vm1, %v712_v0 }
  0x1d   : > { %248 = vst.msk [vmem:[#allocation2 + $0x68] sm:$0x3] %vm235_vm1, %v712_v0 }
  0x1e   : > { %250 = vst.msk [vmem:[#allocation2 + $0x78] sm:$0x3] %vm235_vm1, %v712_v0  ;;  %v299_v5 = vld [vmem:[#allocation2 + $0x1] sm:$0xff] }
  0x1f   : > { %252 = vst.msk [vmem:[#allocation2 + $0x88] sm:$0x3] %vm235_vm1, %v712_v0  ;;  %v308_v8 = vmul.f32 %v782_v2, %v299_v5  ;;  %v325_v11 = vld [vmem:[#allocation2 + $0x2] sm:$0xff] }
  0x20   : > { %254 = vst.msk [vmem:[#allocation2 + $0x98] sm:$0x3] %vm235_vm1, %v712_v0  ;;  %v334_v16 = vmul.f32 %v793_v9, %v325_v11 }
  0x21   : > { %264 = vst.msk [vmem:[#allocation2 + $0x11] sm:$0xff] %vm233_vm0, %v255_v4  ;;  %v316_v15 = vadd.f32 %v308_v8, %v282_v7 }
  0x22   : > { %265 = vst.msk [vmem:[#allocation2 + $0x21] sm:$0xff] %vm233_vm0, %v256_v6 }
  0x23   : > { %266 = vst.msk [vmem:[#allocation2 + $0x31] sm:$0xff] %vm233_vm0, %v257_v10  ;;  %v342_v20 = vadd.f32 %v334_v16, %v316_v15  ;;  %v861_v10 = vld [vmem:[%s951_s2] ss:$0 sm:$0xff] }
  0x24   : > { %267 = vst.msk [vmem:[#allocation2 + $0x41] sm:$0xff] %vm233_vm0, %v258_v12 }
  0x25   : > { %268 = vst.msk [vmem:[#allocation2 + $0x51] sm:$0xff] %vm233_vm0, %v259_v13 }
  0x26   : > { %269 = vst.msk [vmem:[#allocation2 + $0x61] sm:$0xff] %vm233_vm0, %v260_v14 }
  0x27   : > { %270 = vst.msk [vmem:[#allocation2 + $0x71] sm:$0xff] %vm233_vm0, %v261_v17 }
  0x28   : > { %271 = vst.msk [vmem:[#allocation2 + $0x81] sm:$0xff] %vm233_vm0, %v262_v18  ;;  %v351_v23 = vld [vmem:[#allocation2 + $0x10] sm:$0xff] }
  0x29   : > { %v377_v24 = vld [vmem:[#allocation2 + $0x11] sm:$0xff]  ;;  %v360_v26 = vmul.f32 %v805_v19, %v351_v23  ;;  %v430_v28 = vld [vmem:[#allocation2 + $0x20] sm:$0xff]  ;;  %v283_v30 = vmul.f32 %v777_v1, %v351_v23 }
  0x2a   : > { %v403_v27 = vld [vmem:[#allocation2 + $0x12] sm:$0xff]  ;;  %v456_v31 = vld [vmem:[#allocation2 + $0x21] sm:$0xff]  ;;  %v309_v33 = vmul.f32 %v782_v2, %v377_v24  ;;  %v386_v35 = vmul.f32 %v812_v21, %v377_v24  ;;  %v439_v38 = vmul.f32 %v823_v25, %v430_v28  ;;  %v284_v45 = vmul.f32 %v777_v1, %v430_v28 }
  0x2b   : > { %v368_v34 = vadd.f32 %v360_v26, %v342_v20  ;;  %v482_v36 = vld [vmem:[#allocation2 + $0x22] sm:$0xff]  ;;  %v412_v37 = vmul.f32 %v817_v22, %v403_v27  ;;  %v335_v40 = vmul.f32 %v793_v9, %v403_v27  ;;  %v465_v42 = vmul.f32 %v829_v29, %v456_v31  ;;  %v431_v43 = vld [vmem:[#allocation2 + $0x30] sm:$0xff] }
  0x2c   : > { %v317_v39 = vadd.f32 %v309_v33, %v283_v30  ;;  %v457_v44 = vld [vmem:[#allocation2 + $0x31] sm:$0xff]  ;;  %v310_v46 = vmul.f32 %v782_v2, %v456_v31  ;;  %v491_v47 = vmul.f32 %v835_v32, %v482_v36  ;;  %v361_v49 = vmul.f32 %v805_v19, %v430_v28  ;;  %v432_v63 = vld [vmem:[#allocation2 + $0x40] sm:$0xff] }
  0x2d   : > { %v394_v41 = vadd.f32 %v386_v35, %v368_v34  ;;  %v387_v50 = vmul.f32 %v812_v21, %v456_v31  ;;  %v413_v52 = vmul.f32 %v817_v22, %v482_v36  ;;  %v483_v53 = vld [vmem:[#allocation2 + $0x32] sm:$0xff]  ;;  %v336_v55 = vmul.f32 %v793_v9, %v482_v36  ;;  %v458_v7 = vld [vmem:[#allocation2 + $0x41] sm:$0xff] }
  0x2e   : > { %v343_v48 = vadd.f32 %v335_v40, %v317_v39  ;;  %v318_v54 = vadd.f32 %v310_v46, %v284_v45  ;;  %v440_v57 = vmul.f32 %v823_v25, %v431_v43  ;;  %v466_v58 = vmul.f32 %v829_v29, %v457_v44  ;;  %v484_v12 = vld [vmem:[#allocation2 + $0x42] sm:$0xff]  ;;  %v433_v26 = vld [vmem:[#allocation2 + $0x50] sm:$0xff] }
  0x2f   : > { %v420_v51 = vadd.f32 %v412_v37, %v394_v41  ;;  %v285_v59 = vmul.f32 %v777_v1, %v431_v43  ;;  %v362_v62 = vmul.f32 %v805_v19, %v431_v43  ;;  %v311_v0 = vmul.f32 %v782_v2, %v457_v44  ;;  %v459_v37 = vld [vmem:[#allocation2 + $0x51] sm:$0xff] }
  0x30   : > { %v369_v56 = vadd.f32 %v361_v49, %v343_v48  ;;  %v344_v61 = vadd.f32 %v336_v55, %v318_v54  ;;  %v492_v4 = vmul.f32 %v835_v32, %v483_v53  ;;  %v388_v5 = vmul.f32 %v812_v21, %v457_v44  ;;  %v485_v45 = vld [vmem:[#allocation2 + $0x52] sm:$0xff] }
  0x31   : > { %v447_v60 = vadd.f32 %v439_v38, %v420_v51  ;;  %v414_v6 = vmul.f32 %v817_v22, %v483_v53  ;;  %v319_v13 = vadd.f32 %v311_v0, %v285_v59  ;;  %v337_v14 = vmul.f32 %v793_v9, %v483_v53  ;;  %v460_v59 = vld [vmem:[#allocation2 + $0x61] sm:$0xff] }
  0x32   : > { %v395_v3 = vadd.f32 %v387_v50, %v369_v56  ;;  %v370_v11 = vadd.f32 %v362_v62, %v344_v61  ;;  %v441_v16 = vmul.f32 %v823_v25, %v432_v63  ;;  %v363_v17 = vmul.f32 %v805_v19, %v432_v63  ;;  %v434_v56 = vld [vmem:[#allocation2 + $0x60] sm:$0xff] }
  0x33   : > { %v473_v8 = vadd.f32 %v465_v42, %v447_v60  ;;  %v286_v18 = vmul.f32 %v777_v1, %v432_v63  ;;  %v345_v24 = vadd.f32 %v337_v14, %v319_v13  ;;  %v312_v27 = vmul.f32 %v782_v2, %v458_v7  ;;  %v435_v14 = vld [vmem:[#allocation2 + $0x70] sm:$0xff] }
  0x34   : > { %v421_v15 = vadd.f32 %v413_v52, %v395_v3  ;;  %v396_v23 = vadd.f32 %v388_v5, %v370_v11  ;;  %v467_v30 = vmul.f32 %v829_v29, %v458_v7  ;;  %v389_v31 = vmul.f32 %v812_v21, %v458_v7  ;;  %v486_v5 = vld [vmem:[#allocation2 + $0x62] sm:$0xff] }
  0x35   : > { %v499_v20 = vadd.f32 %v491_v47, %v473_v8  ;;  %v338_v33 = vmul.f32 %v793_v9, %v484_v12  ;;  %v371_v36 = vadd.f32 %v363_v17, %v345_v24  ;;  %v320_v38 = vadd.f32 %v312_v27, %v286_v18  ;;  %v461_v24 = vld [vmem:[#allocation2 + $0x71] sm:$0xff] }
  0x36   : > { %v448_v28 = vadd.f32 %v440_v57, %v421_v15  ;;  %v422_v35 = vadd.f32 %v414_v6, %v396_v23  ;;  %v493_v40 = vmul.f32 %v835_v32, %v484_v12  ;;  %v415_v41 = vmul.f32 %v817_v22, %v484_v12 }
  0x37   : > { %v511_v34 = vadd.f32 %v861_v10, %v499_v20  ;;  %v442_v42 = vmul.f32 %v823_v25, %v433_v26  ;;  %v397_v44 = vadd.f32 %v389_v31, %v371_v36  ;;  %v346_v46 = vadd.f32 %v338_v33, %v320_v38  ;;  %v487_v36 = vld [vmem:[#allocation2 + $0x72] sm:$0xff]  ;;  %v436_v38 = vld [vmem:[#allocation2 + $0x80] sm:$0xff] }
  0x38   : > { %v474_v39 = vadd.f32 %v466_v58, %v448_v28  ;;  %v449_v43 = vadd.f32 %v441_v16, %v422_v35  ;;  %v364_v47 = vmul.f32 %v805_v19, %v433_v26  ;;  %v468_v49 = vmul.f32 %v829_v29, %v459_v37 }
  0x39   : > { %519 = vst.msk [vmem:[%s873_s20] sm:$0xff] %vm233_vm0, %v511_v34  ;;  %v287_v50 = vmul.f32 %v777_v1, %v433_v26  ;;  %v313_v51 = vmul.f32 %v782_v2, %v459_v37  ;;  %v423_v53 = vadd.f32 %v415_v41, %v397_v44  ;;  %v390_v55 = vmul.f32 %v812_v21, %v459_v37 }
  0x3a   : > { %v500_v48 = vadd.f32 %v492_v4, %v474_v39  ;;  %v475_v52 = vadd.f32 %v467_v30, %v449_v43  ;;  %v372_v54 = vadd.f32 %v364_v47, %v346_v46  ;;  %v494_v58 = vmul.f32 %v835_v32, %v485_v45 }
  0x3b   : > { %v321_v60 = vadd.f32 %v313_v51, %v287_v50  ;;  %v339_v61 = vmul.f32 %v793_v9, %v485_v45  ;;  %v450_v63 = vadd.f32 %v442_v42, %v423_v53  ;;  %v416_v3 = vmul.f32 %v817_v22, %v485_v45 }
  0x3c   : > { %v512_v57 = vadd.f32 %v861_v10, %v500_v48  ;;  %v501_v62 = vadd.f32 %v493_v40, %v475_v52  ;;  %v398_v0 = vadd.f32 %v390_v55, %v372_v54  ;;  %v443_v4 = vmul.f32 %v823_v25, %v434_v56  ;;  %v462_v52 = vld [vmem:[#allocation2 + $0x81] sm:$0xff] }
  0x3d   : > { %v347_v6 = vadd.f32 %v339_v61, %v321_v60  ;;  %v365_v7 = vmul.f32 %v805_v19, %v434_v56  ;;  %v288_v8 = vmul.f32 %v777_v1, %v434_v56  ;;  %v476_v12 = vadd.f32 %v468_v49, %v450_v63 }
  0x3e   : > { %520 = vst.msk [vmem:[%s873_s20 + $0x8] sm:$0xff] %vm233_vm0, %v512_v57  ;;  %v513_v11 = vadd.f32 %v861_v10, %v501_v62  ;;  %v424_v13 = vadd.f32 %v416_v3, %v398_v0  ;;  %v314_v15 = vmul.f32 %v782_v2, %v460_v59  ;;  %v469_v16 = vmul.f32 %v829_v29, %v460_v59 }
  0x3f   : > { %v373_v17 = vadd.f32 %v365_v7, %v347_v6  ;;  %v391_v18 = vmul.f32 %v812_v21, %v460_v59  ;;  %v502_v20 = vadd.f32 %v494_v58, %v476_v12  ;;  %v340_v27 = vmul.f32 %v793_v9, %v486_v5  ;;  %v488_v58 = vld [vmem:[#allocation2 + $0x82] sm:$0xff]  ;;  %v463_v7 = vld [vmem:[#allocation2 + $0x91] sm:$0xff] }
  0x40   : > { %521 = vst.msk [vmem:[%s873_s20 + $0x10] sm:$0xff] %vm233_vm0, %v513_v11  ;;  %v451_v23 = vadd.f32 %v443_v4, %v424_v13  ;;  %v322_v26 = vadd.f32 %v314_v15, %v288_v8  ;;  %v495_v28 = vmul.f32 %v835_v32, %v486_v5  ;;  %v417_v31 = vmul.f32 %v817_v22, %v486_v5  ;;  %v489_v11 = vld [vmem:[#allocation2 + $0x92] sm:$0xff] }
  0x41   : > { %v399_v30 = vadd.f32 %v391_v18, %v373_v17  ;;  %v366_v33 = vmul.f32 %v805_v19, %v435_v14  ;;  %v514_v34 = vadd.f32 %v861_v10, %v502_v20  ;;  %v289_v39 = vmul.f32 %v777_v1, %v435_v14 }
  0x42   : > { %v477_v35 = vadd.f32 %v469_v16, %v451_v23  ;;  %v348_v37 = vadd.f32 %v340_v27, %v322_v26  ;;  %v444_v41 = vmul.f32 %v823_v25, %v435_v14  ;;  %v315_v42 = vmul.f32 %v782_v2, %v461_v24 }
  0x43   : > { %v425_v40 = vadd.f32 %v417_v31, %v399_v30  ;;  %522 = vst.msk [vmem:[%s873_s20 + $0x18] sm:$0xff] %vm233_vm0, %v514_v34  ;;  %v470_v44 = vmul.f32 %v829_v29, %v461_v24  ;;  %v392_v46 = vmul.f32 %v812_v21, %v461_v24  ;;  %v341_v49 = vmul.f32 %v793_v9, %v487_v36  ;;  %v437_v9 = vld [vmem:[#allocation2 + $0x90] sm:$0xff] }
  0x44   : > { %v503_v43 = vadd.f32 %v495_v28, %v477_v35  ;;  %v374_v45 = vadd.f32 %v366_v33, %v348_v37  ;;  %v323_v48 = vadd.f32 %v315_v42, %v289_v39  ;;  %v367_v1 = vmul.f32 %v805_v19, %v436_v38 }
  0x45   : > { %v452_v47 = vadd.f32 %v444_v41, %v425_v40  ;;  %v418_v2 = vmul.f32 %v817_v22, %v487_v36  ;;  %v496_v54 = vmul.f32 %v835_v32, %v487_v36  ;;  %v445_v57 = vmul.f32 %v823_v25, %v436_v38 }
  0x46   : > { %v515_v50 = vadd.f32 %v861_v10, %v503_v43  ;;  %v400_v51 = vadd.f32 %v392_v46, %v374_v45  ;;  %v349_v55 = vadd.f32 %v341_v49, %v323_v48  ;;  %v393_v60 = vmul.f32 %v812_v21, %v462_v52 }
  0x47   : > { %v478_v53 = vadd.f32 %v470_v44, %v452_v47  ;;  %v471_v62 = vmul.f32 %v829_v29, %v462_v52  ;;  %v419_v3 = vmul.f32 %v817_v22, %v488_v58  ;;  %v446_v4 = vmul.f32 %v823_v25, %v437_v9 }
  0x48   : > { %523 = vst.msk [vmem:[%s873_s20 + $0x20] sm:$0xff] %vm233_vm0, %v515_v50  ;;  %v426_v56 = vadd.f32 %v418_v2, %v400_v51  ;;  %v375_v19 = vadd.f32 %v367_v1, %v349_v55  ;;  %v497_v6 = vmul.f32 %v835_v32, %v488_v58  ;;  %v472_v13 = vmul.f32 %v829_v29, %v463_v7 }
  0x49   : > { %v504_v59 = vadd.f32 %v496_v54, %v478_v53  ;;  %v498_v22 = vmul.f32 %v835_v32, %v489_v11 }
  0x4a   : > { %v453_v61 = vadd.f32 %v445_v57, %v426_v56  ;;  %v401_v0 = vadd.f32 %v393_v60, %v375_v19 }
  0x4b   : > { %v516_v63 = vadd.f32 %v861_v10, %v504_v59 }
  0x4c   : > { %v479_v5 = vadd.f32 %v471_v62, %v453_v61  ;;  %v427_v8 = vadd.f32 %v419_v3, %v401_v0 }
  0x4d   : > { %524 = vst.msk [vmem:[%s873_s20 + $0x28] sm:$0xff] %vm233_vm0, %v516_v63 }
  0x4e   : > { %v505_v21 = vadd.f32 %v497_v6, %v479_v5  ;;  %v454_v12 = vadd.f32 %v446_v4, %v427_v8 }
  0x50   : > { %v517_v14 = vadd.f32 %v861_v10, %v505_v21  ;;  %v480_v15 = vadd.f32 %v472_v13, %v454_v12 }
  0x52   : > { %525 = vst.msk [vmem:[%s873_s20 + $0x30] sm:$0xff] %vm233_vm0, %v517_v14  ;;  %v506_v25 = vadd.f32 %v498_v22, %v480_v15 }
  0x54   : > { %v518_v16 = vadd.f32 %v861_v10, %v506_v25 }
  0x56   : > { %526 = vst.msk [vmem:[%s873_s20 + $0x38] sm:$0xff] %vm233_vm0, %v518_v16 }
  0x57 PF: > { %s13_s14 = sadd.s32 1, %s710_s14   ;;  %s953_s12 = smov %s706_s13 }
  0x58   : > { %p10_p5 = scmp.ge.s32.totalorder %s13_s14, 4   ;;  %s954_s13 = smov %s956_s15 }
  0x5a   :  { %12 = sbr.rel (!%p10_p5) target bundleno = 2 (0x2), region = 70 }

// kernel: wtconv_forward_pallas.5
= control target key start
LH: loop header
LB: loop body
LE: loop exit
PB: predicated region body
PF: predicated region fallthrough
CT: control target
= control target key end

     0   :  { %s595_s12 = smov 0   ;;  %s597_s13 = smov 0   ;;  %s733_s0 = inlined_call_operand.vmem [shape: f32[2,4,4,16], index: 0, kind: input, shape index: {}]   ;;  %s734_s1 = inlined_call_operand.vmem [shape: f32[9,16], index: 1, kind: input, shape index: {}]   ;;  %s735_s2 = inlined_call_operand.vmem [shape: f32[1,16], index: 2, kind: input, shape index: {}]   ;;  %s736_s3 = inlined_call_operand.vmem [shape: f32[2,4,4,16], index: 3, kind: output, shape index: {}]  }
   0x1   :  { %s599_s14 = smov 0  }
   0x2 LB: > { %s25_s15 = sadd.s32 1, %s568_s13  ;;  %p506_p0 = scmp.ge.s32.totalorder %s572_s14, 1  ;;  %s572_s14 = sphi %s599_s14, %s13_s14   ;;  %s568_s13 = sphi %s597_s13, %s738_s13   ;;  %s564_s12 = sphi %s595_s12, %s737_s12  }
   0x3   : > { %p27_p1 = scmp.ge.s32.totalorder %s25_s15, 2  ;;  %p173_p2 = scmp.lt.s32.totalorder %s572_s14, 3 }
   0x5   : > { %s740_s15 = smov (%p27_p1, %s25_s15), 0  ;;  %p174_p3 = pnand %p506_p0, %p173_p2 }
   0x6   : > { %p210_p4 = scmp.lt.s32.totalorder (!%p174_p3), %s564_s12, 1 }
   0x7   : > { %177 = sbr.rel (%p174_p3) target bundleno = 54 (0x36), region = 32 }
   0xc   : > { %vm233_vm0 = vcmask 128000   ;;  %v574_v0 = vmov 0.0   ;;  %s742_s12 = smov (!%p210_p4, %s564_s12), 1  ;;  %v618_v1 = vld [vmem:[%s734_s1] ss:$0 sm:$0xff]  ;;  %vm245_vm1 = vcmask 125952  }
   0xd   : > { %234 = vst.msk [vmem:[#allocation2] sm:$0x3f] %vm233_vm0, %v574_v0  ;;  %v623_v2 = vld [vmem:[%s734_s1 + $0x1] ss:$0 sm:$0xff]  ;;  %s513_s20 = sshll.u32 %s742_s12, 4 }
   0xe   : > { %235 = vst.msk [vmem:[#allocation2 + $0x8] sm:$0x3f] %vm233_vm0, %v574_v0  ;;  %s217_s23 = scalar_lea.vmem %s733_s0, %s513_s20  ;;  %v634_v3 = vld [vmem:[%s734_s1 + $0x2] ss:$0 sm:$0xff]  ;;  %v646_v15 = vld [vmem:[%s734_s1 + $0x3] ss:$0 sm:$0xff]  ;;  %s703_s19 = scalar_lea.vmem %s736_s3, %s513_s20 }
   0xf   : > { %236 = vst.msk [vmem:[#allocation2 + $0x10] sm:$0x3f] %vm233_vm0, %v574_v0  ;;  %v240_v4 = vld [vmem:[%s217_s23] sm:$0xf]  ;;  %v241_v5 = vld [vmem:[%s217_s23 + $0x4] sm:$0xf] }
  0x10   : > { %237 = vst.msk [vmem:[#allocation2 + $0x18] sm:$0x3f] %vm233_vm0, %v574_v0  ;;  %v242_v6 = vld [vmem:[%s217_s23 + $0x8] sm:$0xf]  ;;  %v243_v7 = vld [vmem:[%s217_s23 + $0xc] sm:$0xf] }
  0x11   : > { %238 = vst.msk [vmem:[#allocation2 + $0x20] sm:$0x3f] %vm233_vm0, %v574_v0  ;;  %v651_v17 = vld [vmem:[%s734_s1 + $0x4] ss:$0 sm:$0xff]  ;;  %v657_v22 = vld [vmem:[%s734_s1 + $0x5] ss:$0 sm:$0xff] }
  0x12   : > { %239 = vst.msk [vmem:[#allocation2 + $0x28] sm:$0x3f] %vm233_vm0, %v574_v0  ;;  %v663_v28 = vld [vmem:[%s734_s1 + $0x6] ss:$0 sm:$0xff]  ;;  %v668_v29 = vld [vmem:[%s734_s1 + $0x7] ss:$0 sm:$0xff] }
  0x13   : > { %246 = vst.msk [vmem:[#allocation2 + $0x9] sm:$0xf] %vm245_vm1, %v240_v4  ;;  %v677_v42 = vld [vmem:[%s734_s1 + $0x8] ss:$0 sm:$0xff] }
  0x14   : > { %247 = vst.msk [vmem:[#allocation2 + $0x11] sm:$0xf] %vm245_vm1, %v241_v5  ;;  %v251_v8 = vld [vmem:[#allocation2] sm:$0xf] }
  0x15   : > { %v265_v9 = vld [vmem:[#allocation2 + $0x1] sm:$0xf]  ;;  %248 = vst.msk [vmem:[#allocation2 + $0x19] sm:$0xf] %vm245_vm1, %v242_v6  ;;  %v256_v10 = vmul.f32 %v618_v1, %v251_v8 }
  0x16   : > { %v270_v11 = vmul.f32 %v623_v2, %v265_v9  ;;  %v279_v12 = vld [vmem:[#allocation2 + $0x2] sm:$0xf]  ;;  %249 = vst.msk [vmem:[#allocation2 + $0x21] sm:$0xf] %vm245_vm1, %v243_v7 }
  0x17   : > { %v284_v13 = vmul.f32 %v634_v3, %v279_v12 }
  0x18   : > { %v274_v14 = vadd.f32 %v270_v11, %v256_v10  ;;  %v549_v10 = vld [vmem:[%s735_s2] ss:$0 sm:$0xff] }
  0x1a   : > { %v288_v16 = vadd.f32 %v284_v13, %v274_v14  ;;  %v293_v18 = vld [vmem:[#allocation2 + $0x8] sm:$0xf] }
  0x1b   : > { %v307_v19 = vld [vmem:[#allocation2 + $0x9] sm:$0xf]  ;;  %v298_v20 = vmul.f32 %v646_v15, %v293_v18  ;;  %v336_v32 = vld [vmem:[#allocation2 + $0x10] sm:$0xf] }
  0x1c   : > { %v321_v21 = vld [vmem:[#allocation2 + $0xa] sm:$0xf]  ;;  %v312_v27 = vmul.f32 %v651_v17, %v307_v19  ;;  %v350_v33 = vld [vmem:[#allocation2 + $0x11] sm:$0xf]  ;;  %v341_v47 = vmul.f32 %v663_v28, %v336_v32  ;;  %v295_v52 = vld [vmem:[#allocation2 + $0x18] sm:$0xf] }
  0x1d   : > { %v252_v23 = vld [vmem:[#allocation2 + $0x8] sm:$0xf]  ;;  %v302_v26 = vadd.f32 %v298_v20, %v288_v16  ;;  %v294_v34 = vld [vmem:[#allocation2 + $0x10] sm:$0xf]  ;;  %v326_v36 = vmul.f32 %v657_v22, %v321_v21  ;;  %v355_v53 = vmul.f32 %v668_v29, %v350_v33  ;;  %v309_v56 = vld [vmem:[#allocation2 + $0x19] sm:$0xf]  ;;  %v300_v7 = vmul.f32 %v646_v15, %v295_v52 }
  0x1e   : > { %v266_v24 = vld [vmem:[#allocation2 + $0x9] sm:$0xf]  ;;  %v257_v30 = vmul.f32 %v618_v1, %v252_v23  ;;  %v253_v39 = vld [vmem:[#allocation2 + $0x10] sm:$0xf]  ;;  %v299_v50 = vmul.f32 %v646_v15, %v294_v34  ;;  %v254_v57 = vld [vmem:[#allocation2 + $0x18] sm:$0xf] }
  0x1f   : > { %v280_v25 = vld [vmem:[#allocation2 + $0xa] sm:$0xf]  ;;  %v271_v31 = vmul.f32 %v623_v2, %v266_v24  ;;  %v316_v35 = vadd.f32 %v312_v27, %v302_v26  ;;  %v267_v40 = vld [vmem:[#allocation2 + $0x11] sm:$0xf]  ;;  %v258_v44 = vmul.f32 %v618_v1, %v253_v39  ;;  %v268_v58 = vld [vmem:[#allocation2 + $0x19] sm:$0xf]  ;;  %v259_v62 = vmul.f32 %v618_v1, %v254_v57 }
  0x20   : > { %v285_v38 = vmul.f32 %v634_v3, %v280_v25  ;;  %v281_v41 = vld [vmem:[#allocation2 + $0x12] sm:$0xf]  ;;  %v272_v45 = vmul.f32 %v623_v2, %v267_v40  ;;  %v282_v63 = vld [vmem:[#allocation2 + $0x1a] sm:$0xf]  ;;  %v296_v0 = vld [vmem:[#allocation2 + $0x20] sm:$0xf]  ;;  %v273_v8 = vmul.f32 %v623_v2, %v268_v58  ;;  %v314_v1 = vmul.f32 %v651_v17, %v309_v56 }
  0x21   : > { %v275_v37 = vadd.f32 %v271_v31, %v257_v30  ;;  %v308_v43 = vld [vmem:[#allocation2 + $0x11] sm:$0xf]  ;;  %v330_v46 = vadd.f32 %v326_v36, %v316_v35  ;;  %v286_v55 = vmul.f32 %v634_v3, %v281_v41  ;;  %v337_v5 = vld [vmem:[#allocation2 + $0x18] sm:$0xf]  ;;  %v287_v19 = vmul.f32 %v634_v3, %v282_v63  ;;  %v338_v24 = vld [vmem:[#allocation2 + $0x20] sm:$0xf] }
  0x22   : > { %v364_v48 = vld [vmem:[#allocation2 + $0x12] sm:$0xf]  ;;  %v276_v54 = vadd.f32 %v272_v45, %v258_v44  ;;  %v313_v61 = vmul.f32 %v651_v17, %v308_v43  ;;  %v323_v13 = vld [vmem:[#allocation2 + $0x1a] sm:$0xf]  ;;  %v277_v18 = vadd.f32 %v273_v8, %v259_v62  ;;  %v301_v20 = vmul.f32 %v646_v15, %v296_v0  ;;  %v310_v25 = vld [vmem:[#allocation2 + $0x21] sm:$0xf] }
  0x23   : > { %v289_v49 = vadd.f32 %v285_v38, %v275_v37  ;;  %v322_v51 = vld [vmem:[#allocation2 + $0x12] sm:$0xf]  ;;  %v345_v59 = vadd.f32 %v341_v47, %v330_v46  ;;  %v369_v4 = vmul.f32 %v677_v42, %v364_v48  ;;  %v351_v14 = vld [vmem:[#allocation2 + $0x19] sm:$0xf]  ;;  %v342_v23 = vmul.f32 %v663_v28, %v337_v5  ;;  %v339_v31 = vld [vmem:[#allocation2 + $0x28] sm:$0xf] }
  0x24   : > { %v290_v6 = vadd.f32 %v286_v55, %v276_v54  ;;  %v327_v12 = vmul.f32 %v657_v22, %v322_v51  ;;  %v365_v26 = vld [vmem:[#allocation2 + $0x1a] sm:$0xf]  ;;  %v328_v30 = vmul.f32 %v657_v22, %v323_v13  ;;  %v291_v3 = vadd.f32 %v287_v19, %v277_v18  ;;  %v352_v34 = vld [vmem:[#allocation2 + $0x21] sm:$0xf]  ;;  %v367_v54 = vld [vmem:[#allocation2 + $0x2a] sm:$0xf] }
  0x25   : > { %v303_v60 = vadd.f32 %v299_v50, %v289_v49  ;;  %v359_v9 = vadd.f32 %v355_v53, %v345_v59  ;;  %v356_v33 = vmul.f32 %v668_v29, %v351_v14  ;;  %v324_v35 = vld [vmem:[#allocation2 + $0x22] sm:$0xf]  ;;  %v343_v37 = vmul.f32 %v663_v28, %v338_v24  ;;  %v353_v50 = vld [vmem:[#allocation2 + $0x29] sm:$0xf] }
  0x26   : > { %v304_v16 = vadd.f32 %v300_v7, %v290_v6  ;;  %v305_v38 = vadd.f32 %v301_v20, %v291_v3  ;;  %v315_v39 = vmul.f32 %v651_v17, %v310_v25  ;;  %v370_v41 = vmul.f32 %v677_v42, %v365_v26  ;;  %v366_v43 = vld [vmem:[#allocation2 + $0x22] sm:$0xf] }
  0x27   : > { %v317_v11 = vadd.f32 %v313_v61, %v303_v60  ;;  %v373_v2 = vadd.f32 %v369_v4, %v359_v9  ;;  %v344_v44 = vmul.f32 %v663_v28, %v339_v31  ;;  %v357_v46 = vmul.f32 %v668_v29, %v352_v34 }
  0x28   : > { %v318_v27 = vadd.f32 %v314_v1, %v304_v16  ;;  %v319_v47 = vadd.f32 %v315_v39, %v305_v38  ;;  %v329_v48 = vmul.f32 %v657_v22, %v324_v35  ;;  %v371_v51 = vmul.f32 %v677_v42, %v366_v43 }
  0x29   : > { %v331_v21 = vadd.f32 %v327_v12, %v317_v11  ;;  %v381_v15 = vadd.f32 %v549_v10, %v373_v2  ;;  %v358_v28 = vmul.f32 %v668_v29, %v353_v50  ;;  %v372_v59 = vmul.f32 %v677_v42, %v367_v54 }
  0x2a   : > { %v332_v36 = vadd.f32 %v328_v30, %v318_v27  ;;  %v333_v52 = vadd.f32 %v329_v48, %v319_v47 }
  0x2b   : > { %v346_v32 = vadd.f32 %v342_v23, %v331_v21  ;;  %385 = vst.msk [vmem:[%s703_s19] sm:$0xf] %vm245_vm1, %v381_v15 }
  0x2c   : > { %v347_v45 = vadd.f32 %v343_v37, %v332_v36  ;;  %v348_v56 = vadd.f32 %v344_v44, %v333_v52 }
  0x2d   : > { %v360_v40 = vadd.f32 %v356_v33, %v346_v32 }
  0x2e   : > { %v361_v17 = vadd.f32 %v357_v46, %v347_v45  ;;  %v362_v58 = vadd.f32 %v358_v28, %v348_v56 }
  0x2f   : > { %v374_v49 = vadd.f32 %v370_v41, %v360_v40 }
  0x30   : > { %v375_v55 = vadd.f32 %v371_v51, %v361_v17  ;;  %v376_v22 = vadd.f32 %v372_v59, %v362_v58 }
  0x31   : > { %v382_v53 = vadd.f32 %v549_v10, %v374_v49 }
  0x32   : > { %v383_v57 = vadd.f32 %v549_v10, %v375_v55  ;;  %v384_v60 = vadd.f32 %v549_v10, %v376_v22 }
  0x33   : > { %386 = vst.msk [vmem:[%s703_s19 + $0x4] sm:$0xf] %vm245_vm1, %v382_v53 }
  0x34   : > { %387 = vst.msk [vmem:[%s703_s19 + $0x8] sm:$0xf] %vm245_vm1, %v383_v57 }
  0x35   : > { %388 = vst.msk [vmem:[%s703_s19 + $0xc] sm:$0xf] %vm245_vm1, %v384_v60 }
  0x36 PF: > { %s13_s14 = sadd.s32 1, %s572_s14   ;;  %s737_s12 = smov %s568_s13 }
  0x37   : > { %p10_p5 = scmp.ge.s32.totalorder %s13_s14, 4   ;;  %s738_s13 = smov %s740_s15 }
  0x39   :  { %12 = sbr.rel (!%p10_p5) target bundleno = 2 (0x2), region = 70 }

// kernel: wtconv_forward_pallas.3
= control target key start
LH: loop header
LB: loop body
LE: loop exit
PB: predicated region body
PF: predicated region fallthrough
CT: control target
= control target key end

     0   :  { %s1521_s12 = smov 0   ;;  %s1523_s13 = smov 0   ;;  %s2355_s0 = inlined_call_operand.vmem [shape: f32[2,16,16,4], index: 0, kind: input, shape index: {}]   ;;  %s2356_s1 = inlined_call_operand.vmem [shape: f32[9,4], index: 1, kind: input, shape index: {}]   ;;  %s2357_s2 = inlined_call_operand.vmem [shape: f32[1,4], index: 2, kind: input, shape index: {}]   ;;  %s2358_s3 = inlined_call_operand.vmem [shape: f32[2,16,16,4], index: 3, kind: output, shape index: {}]  }
   0x1   :  { %s1525_s14 = smov 0  }
   0x2 LB: > { %s25_s15 = sadd.s32 1, %s1494_s13  ;;  %p1422_p0 = scmp.ge.s32.totalorder %s1498_s14, 1  ;;  %s1498_s14 = sphi %s1525_s14, %s13_s14   ;;  %s1494_s13 = sphi %s1523_s13, %s2360_s13   ;;  %s1490_s12 = sphi %s1521_s12, %s2359_s12  }
   0x3   : > { %p27_p1 = scmp.ge.s32.totalorder %s25_s15, 2  ;;  %p173_p2 = scmp.lt.s32.totalorder %s1498_s14, 3 }
   0x5   : > { %s2362_s15 = smov (%p27_p1, %s25_s15), 0  ;;  %p174_p3 = pnand %p1422_p0, %p173_p2 }
   0x6   : > { %p210_p4 = scmp.lt.s32.totalorder (!%p174_p3), %s1490_s12, 1 }
   0x7   : > { %177 = sbr.rel (%p174_p3) target bundleno = 227 (0xe3), region = 32 }
   0xc   : > { %vm233_vm0 = vcmask 31744   ;;  %v1500_v0 = vmov 0.0   ;;  %vm236_vm1 = vcmask 25600   ;;  %s2364_s12 = smov (!%p210_p4, %s1490_s12), 1  ;;  %v1668_v6 = vld [vmem:[%s2356_s1] ss:$0 sm:$0xff] }
   0xd   : > { %234 = vst.msk [vmem:[#allocation2] sm:$0xff] %vm233_vm0, %v1500_v0  ;;  %s1429_s16 = sshll.u32 %s2364_s12, 8  ;;  %v1674_v8 = vld [vmem:[%s2356_s1 + $0x1] ss:$0 sm:$0xff]  ;;  %v1679_v10 = vld [vmem:[%s2356_s1 + $0x2] ss:$0 sm:$0xff] }
   0xe   : > { %235 = vst.msk [vmem:[#allocation2 + $0x8] sm:$0xff] %vm233_vm0, %v1500_v0  ;;  %s1649_s19 = scalar_lea.vmem %s2355_s0, %s1429_s16  ;;  %v1697_v24 = vld [vmem:[%s2356_s1 + $0x3] ss:$0 sm:$0xff]  ;;  %v1709_v32 = vld [vmem:[%s2356_s1 + $0x4] ss:$0 sm:$0xff]  ;;  %s1878_s21 = scalar_lea.vmem %s2358_s3, %s1429_s16 }
   0xf   : > { %238 = vst.msk [vmem:[#allocation2 + $0x18] sm:$0xff] %vm233_vm0, %v1500_v0  ;;  %v289_v1 = vld [vmem:[%s1649_s19] sm:$0xff]  ;;  %v290_v2 = vld [vmem:[%s1649_s19 + $0x8] sm:$0xff]  ;;  %v291_v3 = vld [vmem:[%s1649_s19 + $0x10] sm:$0xff] }
  0x10   : > { %239 = vst.msk [vmem:[#allocation2 + $0x20] sm:$0xff] %vm233_vm0, %v1500_v0  ;;  %v292_v4 = vld [vmem:[%s1649_s19 + $0x18] sm:$0xff]  ;;  %v293_v11 = vld [vmem:[%s1649_s19 + $0x20] sm:$0xff]  ;;  %v294_v14 = vld [vmem:[%s1649_s19 + $0x28] sm:$0xff] }
  0x11   : > { %241 = vst.msk [vmem:[#allocation2 + $0x30] sm:$0xff] %vm233_vm0, %v1500_v0  ;;  %v295_v19 = vld [vmem:[%s1649_s19 + $0x30] sm:$0xff]  ;;  %v296_v22 = vld [vmem:[%s1649_s19 + $0x38] sm:$0xff]  ;;  %v297_v26 = vld [vmem:[%s1649_s19 + $0x40] sm:$0xff] }
  0x12   : > { %242 = vst.msk [vmem:[#allocation2 + $0x38] sm:$0xff] %vm233_vm0, %v1500_v0  ;;  %v298_v27 = vld [vmem:[%s1649_s19 + $0x48] sm:$0xff]  ;;  %v299_v29 = vld [vmem:[%s1649_s19 + $0x50] sm:$0xff]  ;;  %v300_v30 = vld [vmem:[%s1649_s19 + $0x58] sm:$0xff] }
  0x13   : > { %244 = vst.msk [vmem:[#allocation2 + $0x48] sm:$0xff] %vm233_vm0, %v1500_v0  ;;  %v301_v33 = vld [vmem:[%s1649_s19 + $0x60] sm:$0xff]  ;;  %v302_v38 = vld [vmem:[%s1649_s19 + $0x68] sm:$0xff]  ;;  %v303_v54 = vld [vmem:[%s1649_s19 + $0x70] sm:$0xff] }
  0x14   : > { %245 = vst.msk [vmem:[#allocation2 + $0x50] sm:$0xff] %vm233_vm0, %v1500_v0  ;;  %v355_v5 = vld [vmem:[#allocation2] sm:$0xff]  ;;  %v1737_v47 = vld [vmem:[%s2356_s1 + $0x8] ss:$0 sm:$0xff]  ;;  %v304_v58 = vld [vmem:[%s1649_s19 + $0x78] sm:$0xff] }
  0x15   : > { %247 = vst.msk [vmem:[#allocation2 + $0x60] sm:$0xff] %vm233_vm0, %v1500_v0  ;;  %v453_v7 = vld [vmem:[#allocation2 + $0x1] sm:$0xff]  ;;  %v388_v12 = vmul.f32 %v1668_v6, %v355_v5 }
  0x16   : > { %248 = vst.msk [vmem:[#allocation2 + $0x68] sm:$0xff] %vm233_vm0, %v1500_v0  ;;  %v551_v9 = vld [vmem:[#allocation2 + $0x2] sm:$0xff]  ;;  %v486_v15 = vmul.f32 %v1674_v8, %v453_v7 }
  0x17   : > { %250 = vst.msk [vmem:[#allocation2 + $0x78] sm:$0xff] %vm233_vm0, %v1500_v0  ;;  %v356_v13 = vld [vmem:[#allocation2 + $0x8] sm:$0xff]  ;;  %v584_v16 = vmul.f32 %v1679_v10, %v551_v9  ;;  %v1716_v36 = vld [vmem:[%s2356_s1 + $0x5] ss:$0 sm:$0xff]  ;;  %v1724_v40 = vld [vmem:[%s2356_s1 + $0x6] ss:$0 sm:$0xff] }
  0x18   : > { %251 = vst.msk [vmem:[#allocation2 + $0x80] sm:$0xff] %vm233_vm0, %v1500_v0  ;;  %v389_v17 = vmul.f32 %v1668_v6, %v356_v13  ;;  %v518_v23 = vadd.f32 %v486_v15, %v388_v12  ;;  %v1732_v46 = vld [vmem:[%s2356_s1 + $0x7] ss:$0 sm:$0xff]  ;;  %v306_v7 = vld [vmem:[%s1649_s19 + $0x88] sm:$0xff]  ;;  %v307_v15 = vld [vmem:[%s1649_s19 + $0x90] sm:$0xff] }
  0x19   : > { %253 = vst.msk [vmem:[#allocation2 + $0x90] sm:$0xff] %vm233_vm0, %v1500_v0 }
  0x1a   : > { %254 = vst.msk [vmem:[#allocation2 + $0x98] sm:$0xff] %vm233_vm0, %v1500_v0  ;;  %v616_v31 = vadd.f32 %v584_v16, %v518_v23 }
  0x1b   : > { %256 = vst.msk [vmem:[#allocation2 + $0xa8] sm:$0xff] %vm233_vm0, %v1500_v0 }
  0x1c   : > { %257 = vst.msk [vmem:[#allocation2 + $0xb0] sm:$0xff] %vm233_vm0, %v1500_v0 }
  0x1d   : > { %259 = vst.msk [vmem:[#allocation2 + $0xc0] sm:$0xff] %vm233_vm0, %v1500_v0 }
  0x1e   : > { %260 = vst.msk [vmem:[#allocation2 + $0xc8] sm:$0xff] %vm233_vm0, %v1500_v0 }
  0x1f   : > { %262 = vst.msk [vmem:[#allocation2 + $0xd8] sm:$0xff] %vm233_vm0, %v1500_v0 }
  0x20   : > { %263 = vst.msk [vmem:[#allocation2 + $0xe0] sm:$0xff] %vm233_vm0, %v1500_v0 }
  0x21   : > { %265 = vst.msk [vmem:[#allocation2 + $0xf0] sm:$0xff] %vm233_vm0, %v1500_v0 }
  0x22   : > { %266 = vst.msk [vmem:[#allocation2 + $0xf8] sm:$0xff] %vm233_vm0, %v1500_v0 }
  0x23   : > { %268 = vst.msk [vmem:[#allocation2 + $0x108] sm:$0xff] %vm233_vm0, %v1500_v0 }
  0x24   : > { %269 = vst.msk [vmem:[#allocation2 + $0x110] sm:$0xff] %vm233_vm0, %v1500_v0 }
  0x25   : > { %271 = vst.msk [vmem:[#allocation2 + $0x120] sm:$0xff] %vm233_vm0, %v1500_v0 }
  0x26   : > { %272 = vst.msk [vmem:[#allocation2 + $0x128] sm:$0xff] %vm233_vm0, %v1500_v0 }
  0x27   : > { %274 = vst.msk [vmem:[#allocation2 + $0x138] sm:$0xff] %vm233_vm0, %v1500_v0 }
  0x28   : > { %275 = vst.msk [vmem:[#allocation2 + $0x140] sm:$0xff] %vm233_vm0, %v1500_v0 }
  0x29   : > { %277 = vst.msk [vmem:[#allocation2 + $0x150] sm:$0xff] %vm233_vm0, %v1500_v0 }
  0x2a   : > { %278 = vst.msk [vmem:[#allocation2 + $0x158] sm:$0xff] %vm233_vm0, %v1500_v0 }
  0x2b   : > { %280 = vst.msk [vmem:[#allocation2 + $0x168] sm:$0xff] %vm233_vm0, %v1500_v0 }
  0x2c   : > { %281 = vst.msk [vmem:[#allocation2 + $0x170] sm:$0xff] %vm233_vm0, %v1500_v0 }
  0x2d   : > { %283 = vst.msk [vmem:[#allocation2 + $0x180] sm:$0xff] %vm233_vm0, %v1500_v0 }
  0x2e   : > { %284 = vst.msk [vmem:[#allocation2 + $0x188] sm:$0xff] %vm233_vm0, %v1500_v0 }
  0x2f   : > { %286 = vst.msk [vmem:[#allocation2 + $0x198] sm:$0xff] %vm233_vm0, %v1500_v0 }
  0x30   : > { %287 = vst.msk [vmem:[#allocation2 + $0x1a0] sm:$0xff] %vm233_vm0, %v1500_v0 }
  0x31   : > { %237 = vst.msk [vmem:[#allocation2 + $0x10] sm:$0x3] %vm236_vm1, %v1500_v0 }
  0x32   : > { %240 = vst.msk [vmem:[#allocation2 + $0x28] sm:$0x3] %vm236_vm1, %v1500_v0 }
  0x33   : > { %243 = vst.msk [vmem:[#allocation2 + $0x40] sm:$0x3] %vm236_vm1, %v1500_v0 }
  0x34   : > { %246 = vst.msk [vmem:[#allocation2 + $0x58] sm:$0x3] %vm236_vm1, %v1500_v0 }
  0x35   : > { %249 = vst.msk [vmem:[#allocation2 + $0x70] sm:$0x3] %vm236_vm1, %v1500_v0 }
  0x36   : > { %252 = vst.msk [vmem:[#allocation2 + $0x88] sm:$0x3] %vm236_vm1, %v1500_v0 }
  0x37   : > { %255 = vst.msk [vmem:[#allocation2 + $0xa0] sm:$0x3] %vm236_vm1, %v1500_v0 }
  0x38   : > { %258 = vst.msk [vmem:[#allocation2 + $0xb8] sm:$0x3] %vm236_vm1, %v1500_v0  ;;  %v454_v18 = vld [vmem:[#allocation2 + $0x9] sm:$0xff] }
  0x39   : > { %261 = vst.msk [vmem:[#allocation2 + $0xd0] sm:$0x3] %vm236_vm1, %v1500_v0  ;;  %v487_v20 = vmul.f32 %v1674_v8, %v454_v18  ;;  %v552_v21 = vld [vmem:[#allocation2 + $0xa] sm:$0xff] }
  0x3a   : > { %264 = vst.msk [vmem:[#allocation2 + $0xe8] sm:$0x3] %vm236_vm1, %v1500_v0  ;;  %v585_v25 = vmul.f32 %v1679_v10, %v552_v21  ;;  %v308_v21 = vld [vmem:[%s1649_s19 + $0x98] sm:$0xff] }
  0x3b   : > { %267 = vst.msk [vmem:[#allocation2 + $0x100] sm:$0x3] %vm236_vm1, %v1500_v0  ;;  %v519_v28 = vadd.f32 %v487_v20, %v389_v17 }
  0x3c   : > { %270 = vst.msk [vmem:[#allocation2 + $0x118] sm:$0x3] %vm236_vm1, %v1500_v0 }
  0x3d   : > { %273 = vst.msk [vmem:[#allocation2 + $0x130] sm:$0x3] %vm236_vm1, %v1500_v0  ;;  %v617_v37 = vadd.f32 %v585_v25, %v519_v28 }
  0x3e   : > { %276 = vst.msk [vmem:[#allocation2 + $0x148] sm:$0x3] %vm236_vm1, %v1500_v0 }
  0x3f   : > { %279 = vst.msk [vmem:[#allocation2 + $0x160] sm:$0x3] %vm236_vm1, %v1500_v0 }
  0x40   : > { %282 = vst.msk [vmem:[#allocation2 + $0x178] sm:$0x3] %vm236_vm1, %v1500_v0 }
  0x41   : > { %285 = vst.msk [vmem:[#allocation2 + $0x190] sm:$0x3] %vm236_vm1, %v1500_v0 }
  0x42   : > { %288 = vst.msk [vmem:[#allocation2 + $0x1a8] sm:$0x3] %vm236_vm1, %v1500_v0  ;;  %v305_v0 = vld [vmem:[%s1649_s19 + $0x80] sm:$0xff] }
  0x43   : > { %322 = vst.msk [vmem:[#allocation2 + $0x19] sm:$0xff] %vm233_vm0, %v289_v1 }
  0x44   : > { %323 = vst.msk [vmem:[#allocation2 + $0x21] sm:$0xff] %vm233_vm0, %v290_v2 }
  0x45   : > { %324 = vst.msk [vmem:[#allocation2 + $0x31] sm:$0xff] %vm233_vm0, %v291_v3 }
  0x46   : > { %325 = vst.msk [vmem:[#allocation2 + $0x39] sm:$0xff] %vm233_vm0, %v292_v4 }
  0x47   : > { %326 = vst.msk [vmem:[#allocation2 + $0x49] sm:$0xff] %vm233_vm0, %v293_v11 }
  0x48   : > { %327 = vst.msk [vmem:[#allocation2 + $0x51] sm:$0xff] %vm233_vm0, %v294_v14 }
  0x49   : > { %328 = vst.msk [vmem:[#allocation2 + $0x61] sm:$0xff] %vm233_vm0, %v295_v19 }
  0x4a   : > { %329 = vst.msk [vmem:[#allocation2 + $0x69] sm:$0xff] %vm233_vm0, %v296_v22  ;;  %v649_v34 = vld [vmem:[#allocation2 + $0x18] sm:$0xff] }
  0x4b   : > { %v747_v35 = vld [vmem:[#allocation2 + $0x19] sm:$0xff]  ;;  %330 = vst.msk [vmem:[#allocation2 + $0x79] sm:$0xff] %vm233_vm0, %v297_v26  ;;  %v682_v39 = vmul.f32 %v1697_v24, %v649_v34  ;;  %v748_v42 = vld [vmem:[#allocation2 + $0x21] sm:$0xff]  ;;  %v390_v43 = vmul.f32 %v1668_v6, %v649_v34 }
  0x4c   : > { %v650_v41 = vld [vmem:[#allocation2 + $0x20] sm:$0xff]  ;;  %v488_v44 = vmul.f32 %v1674_v8, %v747_v35  ;;  %331 = vst.msk [vmem:[#allocation2 + $0x81] sm:$0xff] %vm233_vm0, %v298_v27  ;;  %v780_v50 = vmul.f32 %v1709_v32, %v747_v35  ;;  %v944_v51 = vld [vmem:[#allocation2 + $0x30] sm:$0xff]  ;;  %v781_v57 = vmul.f32 %v1709_v32, %v748_v42  ;;  %v489_v20 = vmul.f32 %v1674_v8, %v748_v42  ;;  %v310_v35 = vld [vmem:[%s1649_s19 + $0xa8] sm:$0xff] }
  0x4d   : > { %v845_v45 = vld [vmem:[#allocation2 + $0x1a] sm:$0xff]  ;;  %v683_v48 = vmul.f32 %v1697_v24, %v650_v41  ;;  %332 = vst.msk [vmem:[#allocation2 + $0x91] sm:$0xff] %vm233_vm0, %v299_v29  ;;  %v714_v49 = vadd.f32 %v682_v39, %v616_v31  ;;  %v1042_v52 = vld [vmem:[#allocation2 + $0x31] sm:$0xff]  ;;  %v846_v53 = vld [vmem:[#allocation2 + $0x22] sm:$0xff]  ;;  %v977_v1 = vmul.f32 %v1724_v40, %v944_v51  ;;  %v684_v14 = vmul.f32 %v1697_v24, %v944_v51 }
  0x4e   : > { %333 = vst.msk [vmem:[#allocation2 + $0x99] sm:$0xff] %vm233_vm0, %v300_v30  ;;  %v1744_v55 = vld [vmem:[#allocation2 + $0x32] sm:$0xff]  ;;  %v878_v60 = vmul.f32 %v1716_v36, %v845_v45  ;;  %v520_v62 = vadd.f32 %v488_v44, %v390_v43  ;;  %v586_v63 = vmul.f32 %v1679_v10, %v845_v45  ;;  %v1075_v2 = vmul.f32 %v1732_v46, %v1042_v52  ;;  %v1764_v12 = vld [vmem:[#allocation2 + $0x3a] sm:$0xff]  ;;  %v1771_v18 = vld [vmem:[#allocation2 + $0x48] sm:$0xff] }
  0x4f   : > { %v715_v56 = vadd.f32 %v683_v48, %v617_v37  ;;  %334 = vst.msk [vmem:[#allocation2 + $0xa9] sm:$0xff] %vm233_vm0, %v301_v33  ;;  %v812_v59 = vadd.f32 %v780_v50, %v714_v49  ;;  %v1750_v61 = vld [vmem:[#allocation2 + $0x38] sm:$0xff]  ;;  %v879_v4 = vmul.f32 %v1716_v36, %v846_v53  ;;  %v1173_v11 = vmul.f32 %v1737_v47, %v1744_v55  ;;  %v309_v27 = vld [vmem:[%s1649_s19 + $0xa0] sm:$0xff]  ;;  %v1784_v30 = vld [vmem:[#allocation2 + $0x49] sm:$0xff] }
  0x50   : > { %335 = vst.msk [vmem:[#allocation2 + $0xb1] sm:$0xff] %vm233_vm0, %v302_v38  ;;  %v1758_v5 = vld [vmem:[#allocation2 + $0x39] sm:$0xff]  ;;  %v618_v13 = vadd.f32 %v586_v63, %v520_v62  ;;  %v978_v17 = vmul.f32 %v1724_v40, %v1750_v61  ;;  %v391_v19 = vmul.f32 %v1668_v6, %v650_v41  ;;  %v782_v26 = vmul.f32 %v1709_v32, %v1042_v52  ;;  %v1786_v31 = vld [vmem:[#allocation2 + $0x4a] sm:$0xff] }
  0x51   : > { %v813_v3 = vadd.f32 %v781_v57, %v715_v56  ;;  %336 = vst.msk [vmem:[#allocation2 + $0xc1] sm:$0xff] %vm233_vm0, %v303_v54  ;;  %v910_v9 = vadd.f32 %v878_v60, %v812_v59  ;;  %v1076_v23 = vmul.f32 %v1732_v46, %v1758_v5  ;;  %v1174_v29 = vmul.f32 %v1737_v47, %v1764_v12  ;;  %v311_v42 = vld [vmem:[%s1649_s19 + $0xb0] sm:$0xff]  ;;  %v312_v50 = vld [vmem:[%s1649_s19 + $0xb8] sm:$0xff]  ;;  %v314_v63 = vld [vmem:[%s1649_s19 + $0xc8] sm:$0xff] }
  0x52   : > { %337 = vst.msk [vmem:[#allocation2 + $0xc9] sm:$0xff] %vm233_vm0, %v304_v58  ;;  %v716_v25 = vadd.f32 %v684_v14, %v618_v13  ;;  %v521_v33 = vadd.f32 %v489_v20, %v391_v19  ;;  %v587_v34 = vmul.f32 %v1679_v10, %v846_v53  ;;  %v880_v39 = vmul.f32 %v1716_v36, %v1744_v55  ;;  %v1799_v45 = vld [vmem:[#allocation2 + $0x50] sm:$0xff]  ;;  %v1838_v19 = vld [vmem:[#allocation2 + $0x60] sm:$0xff] }
  0x53   : > { %v911_v16 = vadd.f32 %v879_v4, %v813_v3  ;;  %338 = vst.msk [vmem:[#allocation2 + $0xd9] sm:$0xff] %vm233_vm0, %v305_v0  ;;  %v1009_v22 = vadd.f32 %v977_v1, %v910_v9  ;;  %v979_v41 = vmul.f32 %v1724_v40, %v1771_v18  ;;  %v685_v44 = vmul.f32 %v1697_v24, %v1750_v61  ;;  %v1809_v58 = vld [vmem:[#allocation2 + $0x51] sm:$0xff]  ;;  %v1822_v1 = vld [vmem:[%s2357_s2] ss:$0 sm:$0xff] }
  0x54   : > { %339 = vst.msk [vmem:[#allocation2 + $0xe1] sm:$0xff] %vm233_vm0, %v306_v7  ;;  %v814_v38 = vadd.f32 %v782_v26, %v716_v25  ;;  %v619_v43 = vadd.f32 %v587_v34, %v521_v33  ;;  %v392_v48 = vmul.f32 %v1668_v6, %v944_v51  ;;  %v490_v49 = vmul.f32 %v1674_v8, %v1042_v52  ;;  %v313_v51 = vld [vmem:[%s1649_s19 + $0xc0] sm:$0xff]  ;;  %v1828_v7 = vld [vmem:[#allocation2 + $0x52] sm:$0xff] }
  0x55   : > { %v1010_v28 = vadd.f32 %v978_v17, %v911_v16  ;;  %340 = vst.msk [vmem:[#allocation2 + $0xf1] sm:$0xff] %vm233_vm0, %v307_v15  ;;  %v1107_v37 = vadd.f32 %v1075_v2, %v1009_v22  ;;  %v1077_v56 = vmul.f32 %v1732_v46, %v1784_v30  ;;  %v1175_v57 = vmul.f32 %v1737_v47, %v1786_v31  ;;  %v316_v15 = vld [vmem:[%s1649_s19 + $0xd8] sm:$0xff]  ;;  %v317_v22 = vld [vmem:[%s1649_s19 + $0xe0] sm:$0xff] }
  0x56   : > { %341 = vst.msk [vmem:[#allocation2 + $0xf9] sm:$0xff] %vm233_vm0, %v308_v21  ;;  %v912_v54 = vadd.f32 %v880_v39, %v814_v38  ;;  %v717_v59 = vadd.f32 %v685_v44, %v619_v43  ;;  %v783_v52 = vmul.f32 %v1709_v32, %v1758_v5  ;;  %v522_v60 = vadd.f32 %v490_v49, %v392_v48  ;;  %v1853_v33 = vld [vmem:[#allocation2 + $0x61] sm:$0xff]  ;;  %v320_v43 = vld [vmem:[%s1649_s19 + $0xf8] sm:$0xff] }
  0x57   : > { %342 = vst.msk [vmem:[#allocation2 + $0x109] sm:$0xff] %vm233_vm0, %v309_v27  ;;  %v1108_v53 = vadd.f32 %v1076_v23, %v1010_v28  ;;  %v588_v62 = vmul.f32 %v1679_v10, %v1744_v55  ;;  %v1205_v0 = vadd.f32 %v1173_v11, %v1107_v37  ;;  %v881_v3 = vmul.f32 %v1716_v36, %v1764_v12  ;;  %v315_v55 = vld [vmem:[%s1649_s19 + $0xd0] sm:$0xff]  ;;  %v318_v28 = vld [vmem:[%s1649_s19 + $0xe8] sm:$0xff] }
  0x58   : > { %343 = vst.msk [vmem:[#allocation2 + $0x111] sm:$0xff] %vm233_vm0, %v310_v35  ;;  %v1011_v2 = vadd.f32 %v979_v41, %v912_v54  ;;  %v980_v4 = vmul.f32 %v1724_v40, %v1799_v45  ;;  %v815_v9 = vadd.f32 %v783_v52, %v717_v59  ;;  %v1078_v11 = vmul.f32 %v1732_v46, %v1809_v58  ;;  %v319_v35 = vld [vmem:[%s1649_s19 + $0xf0] sm:$0xff] }
  0x59   : > { %344 = vst.msk [vmem:[#allocation2 + $0x121] sm:$0xff] %vm233_vm0, %v311_v42  ;;  %v620_v13 = vadd.f32 %v588_v62, %v522_v60  ;;  %v686_v14 = vmul.f32 %v1697_v24, %v1771_v18  ;;  %v1206_v16 = vadd.f32 %v1174_v29, %v1108_v53  ;;  %v393_v20 = vmul.f32 %v1668_v6, %v1750_v61  ;;  %v1863_v42 = vld [vmem:[#allocation2 + $0x62] sm:$0xff] }
  0x5a   : > { %345 = vst.msk [vmem:[#allocation2 + $0x129] sm:$0xff] %vm233_vm0, %v312_v50  ;;  %v1109_v17 = vadd.f32 %v1077_v56, %v1011_v2  ;;  %v491_v21 = vmul.f32 %v1674_v8, %v1758_v5  ;;  %v913_v23 = vadd.f32 %v881_v3, %v815_v9  ;;  %v1176_v25 = vmul.f32 %v1737_v47, %v1828_v7  ;;  %v949_v62 = vld [vmem:[#allocation2 + $0x68] sm:$0xff] }
  0x5b   : > { %346 = vst.msk [vmem:[#allocation2 + $0x139] sm:$0xff] %vm233_vm0, %v313_v51  ;;  %v718_v26 = vadd.f32 %v686_v14, %v620_v13  ;;  %v784_v27 = vmul.f32 %v1709_v32, %v1784_v30  ;;  %v1241_v61 = vadd.f32 %v1822_v1, %v1205_v0  ;;  %v589_v34 = vmul.f32 %v1679_v10, %v1764_v12  ;;  %v1145_v13 = vld [vmem:[#allocation2 + $0x6a] sm:$0xff] }
  0x5c   : > { %347 = vst.msk [vmem:[#allocation2 + $0x141] sm:$0xff] %vm233_vm0, %v314_v63  ;;  %v1207_v29 = vadd.f32 %v1175_v57, %v1109_v17  ;;  %v523_v5 = vadd.f32 %v491_v21, %v393_v20  ;;  %v1012_v37 = vadd.f32 %v980_v4, %v913_v23  ;;  %v882_v39 = vmul.f32 %v1716_v36, %v1786_v31  ;;  %v1047_v63 = vld [vmem:[#allocation2 + $0x69] sm:$0xff]  ;;  %v1048_v23 = vld [vmem:[#allocation2 + $0x79] sm:$0xff] }
  0x5d   : > { %348 = vst.msk [vmem:[#allocation2 + $0x151] sm:$0xff] %vm233_vm0, %v315_v55  ;;  %v816_v38 = vadd.f32 %v784_v27, %v718_v26  ;;  %v981_v41 = vmul.f32 %v1724_v40, %v1838_v19  ;;  %v1242_v44 = vadd.f32 %v1822_v1, %v1206_v16  ;;  %v687_v12 = vmul.f32 %v1697_v24, %v1799_v45 }
  0x5e   : > { %349 = vst.msk [vmem:[#allocation2 + $0x159] sm:$0xff] %vm233_vm0, %v316_v15  ;;  %v621_v48 = vadd.f32 %v589_v34, %v523_v5  ;;  %v394_v49 = vmul.f32 %v1668_v6, %v1771_v18  ;;  %v1110_v50 = vadd.f32 %v1078_v11, %v1012_v37  ;;  %v1079_v54 = vmul.f32 %v1732_v46, %v1853_v33 }
  0x5f   : > { %350 = vst.msk [vmem:[#allocation2 + $0x169] sm:$0xff] %vm233_vm0, %v317_v22  ;;  %v914_v53 = vadd.f32 %v882_v39, %v816_v38  ;;  %v492_v56 = vmul.f32 %v1674_v8, %v1784_v30  ;;  %v1243_v18 = vadd.f32 %v1822_v1, %v1207_v29  ;;  %v1177_v57 = vmul.f32 %v1737_v47, %v1863_v42  ;;  %v950_v22 = vld [vmem:[#allocation2 + $0x78] sm:$0xff] }
  0x60   : > { %351 = vst.msk [vmem:[#allocation2 + $0x171] sm:$0xff] %vm233_vm0, %v318_v28  ;;  %v719_v51 = vadd.f32 %v687_v12, %v621_v48  ;;  %v785_v59 = vmul.f32 %v1709_v32, %v1809_v58  ;;  %v1208_v52 = vadd.f32 %v1176_v25, %v1110_v50  ;;  %v590_v0 = vmul.f32 %v1679_v10, %v1786_v31 }
  0x61   : > { %352 = vst.msk [vmem:[#allocation2 + $0x181] sm:$0xff] %vm233_vm0, %v319_v35  ;;  %v1013_v60 = vadd.f32 %v981_v41, %v914_v53  ;;  %v524_v30 = vadd.f32 %v492_v56, %v394_v49  ;;  %v883_v3 = vmul.f32 %v1716_v36, %v1828_v7  ;;  %v688_v4 = vmul.f32 %v1697_v24, %v1838_v19  ;;  %v1925_v41 = vld [vmem:[#allocation2 + $0x80] sm:$0xff] }
  0x62   : > { %353 = vst.msk [vmem:[#allocation2 + $0x189] sm:$0xff] %vm233_vm0, %v320_v43  ;;  %v817_v2 = vadd.f32 %v785_v59, %v719_v51  ;;  %v395_v55 = vmul.f32 %v1668_v6, %v1799_v45  ;;  %v1244_v9 = vadd.f32 %v1822_v1, %v1208_v52  ;;  %v493_v14 = vmul.f32 %v1674_v8, %v1809_v58  ;;  %v1049_v53 = vld [vmem:[#allocation2 + $0x81] sm:$0xff] }
  0x63   : > { %1273 = vst.msk [vmem:[%s1878_s21] sm:$0xff] %vm233_vm0, %v1241_v61  ;;  %v1111_v11 = vadd.f32 %v1079_v54, %v1013_v60  ;;  %v622_v31 = vadd.f32 %v590_v0, %v524_v30  ;;  %v982_v16 = vmul.f32 %v1724_v40, %v949_v62  ;;  %v1080_v17 = vmul.f32 %v1732_v46, %v1047_v63  ;;  %v1146_v61 = vld [vmem:[#allocation2 + $0x7a] sm:$0xff]  ;;  %v1934_v54 = vld [vmem:[#allocation2 + $0x82] sm:$0xff] }
  0x64   : > { %1274 = vst.msk [vmem:[%s1878_s21 + $0x8] sm:$0xff] %vm233_vm0, %v1242_v44  ;;  %v915_v15 = vadd.f32 %v883_v3, %v817_v2  ;;  %v786_v45 = vmul.f32 %v1709_v32, %v1853_v33  ;;  %v525_v25 = vadd.f32 %v493_v14, %v395_v55  ;;  %v591_v58 = vmul.f32 %v1679_v10, %v1828_v7 }
  0x65   : > { %1275 = vst.msk [vmem:[%s1878_s21 + $0x10] sm:$0xff] %vm233_vm0, %v1243_v18  ;;  %v1209_v20 = vadd.f32 %v1177_v57, %v1111_v11  ;;  %v720_v21 = vadd.f32 %v688_v4, %v622_v31  ;;  %v1178_v27 = vmul.f32 %v1737_v47, %v1145_v13  ;;  %v884_v28 = vmul.f32 %v1716_v36, %v1863_v42 }
  0x66   : > { %1276 = vst.msk [vmem:[%s1878_s21 + $0x18] sm:$0xff] %vm233_vm0, %v1244_v9  ;;  %v1014_v26 = vadd.f32 %v982_v16, %v915_v15  ;;  %v689_v29 = vmul.f32 %v1697_v24, %v949_v62  ;;  %v623_v35 = vadd.f32 %v591_v58, %v525_v25  ;;  %v396_v37 = vmul.f32 %v1668_v6, %v1838_v19 }
  0x67   : > { %v1245_v5 = vadd.f32 %v1822_v1, %v1209_v20  ;;  %v818_v34 = vadd.f32 %v786_v45, %v720_v21  ;;  %v983_v39 = vmul.f32 %v1724_v40, %v950_v22  ;;  %v1081_v7 = vmul.f32 %v1732_v46, %v1048_v23  ;;  %v1050_v45 = vld [vmem:[#allocation2 + $0x91] sm:$0xff] }
  0x68   : > { %v1112_v38 = vadd.f32 %v1080_v17, %v1014_v26  ;;  %v494_v43 = vmul.f32 %v1674_v8, %v1853_v33  ;;  %v1179_v48 = vmul.f32 %v1737_v47, %v1146_v61  ;;  %v721_v12 = vadd.f32 %v689_v29, %v623_v35  ;;  %v1148_v20 = vld [vmem:[#allocation2 + $0x92] sm:$0xff] }
  0x69   : > { %1277 = vst.msk [vmem:[%s1878_s21 + $0x20] sm:$0xff] %vm233_vm0, %v1245_v5  ;;  %v916_v44 = vadd.f32 %v884_v28, %v818_v34  ;;  %v787_v49 = vmul.f32 %v1709_v32, %v1047_v63  ;;  %v885_v19 = vmul.f32 %v1716_v36, %v1145_v13  ;;  %v592_v18 = vmul.f32 %v1679_v10, %v1863_v42  ;;  %v953_v34 = vld [vmem:[#allocation2 + $0x98] sm:$0xff] }
  0x6a   : > { %v1210_v50 = vadd.f32 %v1178_v27, %v1112_v38  ;;  %v526_v56 = vadd.f32 %v494_v43, %v396_v37  ;;  %v984_v51 = vmul.f32 %v1724_v40, %v1925_v41  ;;  %v397_v59 = vmul.f32 %v1668_v6, %v949_v62  ;;  %v952_v62 = vld [vmem:[#allocation2 + $0x90] sm:$0xff] }
  0x6b   : > { %v1015_v33 = vadd.f32 %v983_v39, %v916_v44  ;;  %v819_v57 = vadd.f32 %v787_v49, %v721_v12  ;;  %v690_v30 = vmul.f32 %v1697_v24, %v950_v22  ;;  %v495_v0 = vmul.f32 %v1674_v8, %v1047_v63  ;;  %v1051_v44 = vld [vmem:[#allocation2 + $0x99] sm:$0xff] }
  0x6c   : > { %v1246_v52 = vadd.f32 %v1822_v1, %v1210_v50  ;;  %v624_v60 = vadd.f32 %v592_v18, %v526_v56  ;;  %v1082_v4 = vmul.f32 %v1732_v46, %v1049_v53  ;;  %v1180_v42 = vmul.f32 %v1737_v47, %v1934_v54 }
  0x6d   : > { %v1113_v2 = vadd.f32 %v1081_v7, %v1015_v33  ;;  %v917_v3 = vadd.f32 %v885_v19, %v819_v57  ;;  %v788_v9 = vmul.f32 %v1709_v32, %v1048_v23  ;;  %v527_v11 = vadd.f32 %v495_v0, %v397_v59 }
  0x6e   : > { %1278 = vst.msk [vmem:[%s1878_s21 + $0x28] sm:$0xff] %vm233_vm0, %v1246_v52  ;;  %v722_v55 = vadd.f32 %v690_v30, %v624_v60  ;;  %v593_v31 = vmul.f32 %v1679_v10, %v1145_v13  ;;  %v886_v63 = vmul.f32 %v1716_v36, %v1146_v61  ;;  %v691_v16 = vmul.f32 %v1697_v24, %v1925_v41  ;;  %v954_v60 = vld [vmem:[#allocation2 + $0xa8] sm:$0xff] }
  0x6f   : > { %v1211_v14 = vadd.f32 %v1179_v48, %v1113_v2  ;;  %v1016_v15 = vadd.f32 %v984_v51, %v917_v3  ;;  %v398_v25 = vmul.f32 %v1668_v6, %v950_v22  ;;  %v496_v58 = vmul.f32 %v1674_v8, %v1048_v23  ;;  %v1149_v48 = vld [vmem:[#allocation2 + $0x9a] sm:$0xff] }
  0x70   : > { %v820_v17 = vadd.f32 %v788_v9, %v722_v55  ;;  %v625_v21 = vadd.f32 %v593_v31, %v527_v11  ;;  %v985_v13 = vmul.f32 %v1724_v40, %v952_v62  ;;  %v789_v28 = vmul.f32 %v1709_v32, %v1049_v53 }
  0x71   : > { %v1247_v26 = vadd.f32 %v1822_v1, %v1211_v14  ;;  %v1114_v27 = vadd.f32 %v1082_v4, %v1016_v15  ;;  %v528_v35 = vadd.f32 %v496_v58, %v398_v25  ;;  %v594_v37 = vmul.f32 %v1679_v10, %v1146_v61  ;;  %v1052_v4 = vld [vmem:[#allocation2 + $0xa9] sm:$0xff] }
  0x72   : > { %v918_v29 = vadd.f32 %v886_v63, %v820_v17  ;;  %v723_v5 = vadd.f32 %v691_v16, %v625_v21  ;;  %v1083_v22 = vmul.f32 %v1732_v46, %v1050_v45  ;;  %v1181_v23 = vmul.f32 %v1737_v47, %v1148_v20 }
  0x73   : > { %1279 = vst.msk [vmem:[%s1878_s21 + $0x30] sm:$0xff] %vm233_vm0, %v1247_v26  ;;  %v1212_v38 = vadd.f32 %v1180_v42, %v1114_v27  ;;  %v887_v39 = vmul.f32 %v1716_v36, %v1934_v54  ;;  %v626_v12 = vadd.f32 %v594_v37, %v528_v35  ;;  %v692_v49 = vmul.f32 %v1697_v24, %v952_v62  ;;  %v1980_v42 = vld [vmem:[#allocation2 + $0xaa] sm:$0xff] }
  0x74   : > { %v1017_v7 = vadd.f32 %v985_v13, %v918_v29  ;;  %v821_v43 = vadd.f32 %v789_v28, %v723_v5  ;;  %v986_v50 = vmul.f32 %v1724_v40, %v953_v34  ;;  %v399_v19 = vmul.f32 %v1668_v6, %v1925_v41  ;;  %v955_v27 = vld [vmem:[#allocation2 + $0xb0] sm:$0xff] }
  0x75   : > { %v1248_v61 = vadd.f32 %v1822_v1, %v1212_v38  ;;  %v497_v56 = vmul.f32 %v1674_v8, %v1049_v53  ;;  %v724_v57 = vadd.f32 %v692_v49, %v626_v12  ;;  %v790_v51 = vmul.f32 %v1709_v32, %v1050_v45  ;;  %v1053_v29 = vld [vmem:[#allocation2 + $0xb1] sm:$0xff] }
  0x76   : > { %v1115_v18 = vadd.f32 %v1083_v22, %v1017_v7  ;;  %v919_v33 = vadd.f32 %v887_v39, %v821_v43  ;;  %v1084_v59 = vmul.f32 %v1732_v46, %v1051_v44  ;;  %v1182_v52 = vmul.f32 %v1737_v47, %v1149_v48  ;;  %v1151_v38 = vld [vmem:[#allocation2 + $0xb2] sm:$0xff] }
  0x77   : > { %1280 = vst.msk [vmem:[%s1878_s21 + $0x38] sm:$0xff] %vm233_vm0, %v1248_v61  ;;  %v529_v30 = vadd.f32 %v497_v56, %v399_v19  ;;  %v595_v0 = vmul.f32 %v1679_v10, %v1934_v54  ;;  %v822_v3 = vadd.f32 %v790_v51, %v724_v57  ;;  %v888_v53 = vmul.f32 %v1716_v36, %v1148_v20  ;;  %v1054_v57 = vld [vmem:[#allocation2 + $0xc1] sm:$0xff] }
  0x78   : > { %v1213_v2 = vadd.f32 %v1181_v23, %v1115_v18  ;;  %v1018_v41 = vadd.f32 %v986_v50, %v919_v33  ;;  %v693_v9 = vmul.f32 %v1697_v24, %v953_v34  ;;  %v400_v11 = vmul.f32 %v1668_v6, %v952_v62  ;;  %v956_v50 = vld [vmem:[#allocation2 + $0xc0] sm:$0xff] }
  0x79   : > { %v627_v55 = vadd.f32 %v595_v0, %v529_v30  ;;  %v498_v31 = vmul.f32 %v1674_v8, %v1050_v45  ;;  %v920_v54 = vadd.f32 %v888_v53, %v822_v3  ;;  %v987_v63 = vmul.f32 %v1724_v40, %v954_v60  ;;  %v2008_v51 = vld [vmem:[#allocation2 + $0xc2] sm:$0xff] }
  0x7a   : > { %v1249_v14 = vadd.f32 %v1822_v1, %v1213_v2  ;;  %v1116_v15 = vadd.f32 %v1084_v59, %v1018_v41  ;;  %v791_v17 = vmul.f32 %v1709_v32, %v1051_v44  ;;  %v596_v25 = vmul.f32 %v1679_v10, %v1148_v20 }
  0x7b   : > { %v725_v16 = vadd.f32 %v693_v9, %v627_v55  ;;  %v530_v21 = vadd.f32 %v498_v31, %v400_v11  ;;  %v1019_v26 = vadd.f32 %v987_v63, %v920_v54  ;;  %v1085_v62 = vmul.f32 %v1732_v46, %v1052_v4 }
  0x7c   : > { %1281 = vst.msk [vmem:[%s1878_s21 + $0x40] sm:$0xff] %vm233_vm0, %v1249_v14  ;;  %v1214_v58 = vadd.f32 %v1182_v52, %v1116_v15  ;;  %v1183_v45 = vmul.f32 %v1737_v47, %v1980_v42  ;;  %v889_v28 = vmul.f32 %v1716_v36, %v1149_v48  ;;  %v694_v35 = vmul.f32 %v1697_v24, %v954_v60  ;;  %v957_v15 = vld [vmem:[#allocation2 + $0xc8] sm:$0xff] }
  0x7d   : > { %v823_v13 = vadd.f32 %v791_v17, %v725_v16  ;;  %v628_v5 = vadd.f32 %v596_v25, %v530_v21  ;;  %v1117_v37 = vadd.f32 %v1085_v62, %v1019_v26  ;;  %v401_v22 = vmul.f32 %v1668_v6, %v953_v34  ;;  %v1153_v26 = vld [vmem:[#allocation2 + $0xca] sm:$0xff] }
  0x7e   : > { %v1250_v20 = vadd.f32 %v1822_v1, %v1214_v58  ;;  %v499_v23 = vmul.f32 %v1674_v8, %v1051_v44  ;;  %v988_v7 = vmul.f32 %v1724_v40, %v955_v27  ;;  %v792_v12 = vmul.f32 %v1709_v32, %v1052_v4 }
  0x7f   : > { %v921_v39 = vadd.f32 %v889_v28, %v823_v13  ;;  %v726_v43 = vadd.f32 %v694_v35, %v628_v5  ;;  %v1215_v49 = vadd.f32 %v1183_v45, %v1117_v37  ;;  %v1086_v61 = vmul.f32 %v1732_v46, %v1053_v29  ;;  %v958_v37 = vld [vmem:[#allocation2 + $0xd8] sm:$0xff] }
  0x80   : > { %1282 = vst.msk [vmem:[%s1878_s21 + $0x48] sm:$0xff] %vm233_vm0, %v1250_v20  ;;  %v531_v19 = vadd.f32 %v499_v23, %v401_v22  ;;  %v597_v56 = vmul.f32 %v1679_v10, %v1149_v48  ;;  %v1184_v34 = vmul.f32 %v1737_v47, %v1151_v38  ;;  %v890_v33 = vmul.f32 %v1716_v36, %v1980_v42 }
  0x81   : > { %v1020_v18 = vadd.f32 %v988_v7, %v921_v39  ;;  %v824_v44 = vadd.f32 %v792_v12, %v726_v43  ;;  %v1251_v59 = vadd.f32 %v1822_v1, %v1215_v49  ;;  %v695_v30 = vmul.f32 %v1697_v24, %v955_v27  ;;  %v1154_v43 = vld [vmem:[#allocation2 + $0xda] sm:$0xff] }
  0x82   : > { %v629_v52 = vadd.f32 %v597_v56, %v531_v19  ;;  %v402_v0 = vmul.f32 %v1668_v6, %v954_v60  ;;  %v989_v48 = vmul.f32 %v1724_v40, %v956_v50  ;;  %v500_v3 = vmul.f32 %v1674_v8, %v1052_v4  ;;  %v1055_v60 = vld [vmem:[#allocation2 + $0xc9] sm:$0xff] }
  0x83   : > { %v1118_v2 = vadd.f32 %v1086_v61, %v1020_v18  ;;  %v922_v41 = vadd.f32 %v890_v33, %v824_v44  ;;  %1283 = vst.msk [vmem:[%s1878_s21 + $0x50] sm:$0xff] %vm233_vm0, %v1251_v59  ;;  %v1087_v53 = vmul.f32 %v1732_v46, %v1054_v57  ;;  %v1185_v55 = vmul.f32 %v1737_v47, %v2008_v51  ;;  %v2042_v44 = vld [vmem:[#allocation2 + $0xe0] sm:$0xff] }
  0x84   : > { %v727_v9 = vadd.f32 %v695_v30, %v629_v52  ;;  %v793_v11 = vmul.f32 %v1709_v32, %v1053_v29  ;;  %v532_v54 = vadd.f32 %v500_v3, %v402_v0  ;;  %v598_v63 = vmul.f32 %v1679_v10, %v1980_v42 }
  0x85   : > { %v1216_v31 = vadd.f32 %v1184_v34, %v1118_v2  ;;  %v1021_v14 = vadd.f32 %v989_v48, %v922_v41  ;;  %v891_v16 = vmul.f32 %v1716_v36, %v1151_v38  ;;  %v696_v17 = vmul.f32 %v1697_v24, %v956_v50  ;;  %v1057_v41 = vld [vmem:[#allocation2 + $0xe1] sm:$0xff] }
  0x86   : > { %v825_v4 = vadd.f32 %v793_v11, %v727_v9  ;;  %v403_v21 = vmul.f32 %v1668_v6, %v955_v27  ;;  %v630_v62 = vadd.f32 %v598_v63, %v532_v54  ;;  %v501_v45 = vmul.f32 %v1674_v8, %v1053_v29  ;;  %v1056_v27 = vld [vmem:[#allocation2 + $0xd9] sm:$0xff]  ;;  %v2050_v48 = vld [vmem:[#allocation2 + $0xe2] sm:$0xff] }
  0x87   : > { %v1252_v25 = vadd.f32 %v1822_v1, %v1216_v31  ;;  %v1119_v58 = vadd.f32 %v1087_v53, %v1021_v14  ;;  %v990_v28 = vmul.f32 %v1724_v40, %v957_v15  ;;  %v1088_v5 = vmul.f32 %v1732_v46, %v1055_v60 }
  0x88   : > { %v923_v13 = vadd.f32 %v891_v16, %v825_v4  ;;  %v794_v42 = vmul.f32 %v1709_v32, %v1054_v57  ;;  %v728_v20 = vadd.f32 %v696_v17, %v630_v62  ;;  %v533_v22 = vadd.f32 %v501_v45, %v403_v21 }
  0x89   : > { %1284 = vst.msk [vmem:[%s1878_s21 + $0x58] sm:$0xff] %vm233_vm0, %v1252_v25  ;;  %v1217_v35 = vadd.f32 %v1185_v55, %v1119_v58  ;;  %v599_v23 = vmul.f32 %v1679_v10, %v1151_v38  ;;  %v1186_v29 = vmul.f32 %v1737_v47, %v1153_v26  ;;  %v892_v7 = vmul.f32 %v1716_v36, %v2008_v51 }
  0x8a   : > { %v1022_v39 = vadd.f32 %v990_v28, %v923_v13  ;;  %v697_v12 = vmul.f32 %v1697_v24, %v957_v15  ;;  %v826_v61 = vadd.f32 %v794_v42, %v728_v20  ;;  %v404_v56 = vmul.f32 %v1668_v6, %v956_v50  ;;  %v1058_v42 = vld [vmem:[#allocation2 + $0xf1] sm:$0xff] }
  0x8b   : > { %v1253_v49 = vadd.f32 %v1822_v1, %v1217_v35  ;;  %v631_v19 = vadd.f32 %v599_v23, %v533_v22  ;;  %v991_v34 = vmul.f32 %v1724_v40, %v958_v37  ;;  %v1089_v38 = vmul.f32 %v1732_v46, %v1056_v27  ;;  %v1156_v35 = vld [vmem:[#allocation2 + $0xf2] sm:$0xff] }
  0x8c   : > { %v1120_v18 = vadd.f32 %v1088_v5, %v1022_v39  ;;  %v502_v33 = vmul.f32 %v1674_v8, %v1054_v57  ;;  %v924_v59 = vadd.f32 %v892_v7, %v826_v61  ;;  %v1187_v52 = vmul.f32 %v1737_v47, %v1154_v43  ;;  %v961_v61 = vld [vmem:[#allocation2 + $0xf8] sm:$0xff] }
  0x8d   : > { %1285 = vst.msk [vmem:[%s1878_s21 + $0x60] sm:$0xff] %vm233_vm0, %v1253_v49  ;;  %v729_v30 = vadd.f32 %v697_v12, %v631_v19  ;;  %v795_v0 = vmul.f32 %v1709_v32, %v1055_v60  ;;  %v893_v50 = vmul.f32 %v1716_v36, %v1153_v26  ;;  %v600_v53 = vmul.f32 %v1679_v10, %v2008_v51 }
  0x8e   : > { %v1218_v2 = vadd.f32 %v1186_v29, %v1120_v18  ;;  %v534_v3 = vadd.f32 %v502_v33, %v404_v56  ;;  %v1023_v57 = vadd.f32 %v991_v34, %v924_v59  ;;  %v992_v9 = vmul.f32 %v1724_v40, %v2042_v44  ;;  %v1059_v59 = vld [vmem:[#allocation2 + $0xf9] sm:$0xff] }
  0x8f   : > { %v827_v55 = vadd.f32 %v795_v0, %v729_v30  ;;  %v405_v11 = vmul.f32 %v1668_v6, %v957_v15  ;;  %v698_v54 = vmul.f32 %v1697_v24, %v958_v37  ;;  %v503_v63 = vmul.f32 %v1674_v8, %v1055_v60  ;;  %v960_v15 = vld [vmem:[#allocation2 + $0xf0] sm:$0xff] }
  0x90   : > { %v1254_v31 = vadd.f32 %v1822_v1, %v1218_v2  ;;  %v632_v14 = vadd.f32 %v600_v53, %v534_v3  ;;  %v1121_v4 = vadd.f32 %v1089_v38, %v1023_v57  ;;  %v1090_v17 = vmul.f32 %v1732_v46, %v1057_v41 }
  0x91   : > { %v925_v16 = vadd.f32 %v893_v50, %v827_v55  ;;  %v1188_v51 = vmul.f32 %v1737_v47, %v2050_v48  ;;  %v796_v25 = vmul.f32 %v1709_v32, %v1056_v27  ;;  %v535_v58 = vadd.f32 %v503_v63, %v405_v11 }
  0x92   : > { %1286 = vst.msk [vmem:[%s1878_s21 + $0x68] sm:$0xff] %vm233_vm0, %v1254_v31  ;;  %v730_v21 = vadd.f32 %v698_v54, %v632_v14  ;;  %v601_v62 = vmul.f32 %v1679_v10, %v1153_v26  ;;  %v1219_v45 = vadd.f32 %v1187_v52, %v1121_v4  ;;  %v894_v60 = vmul.f32 %v1716_v36, %v1154_v43  ;;  %v2082_v52 = vld [vmem:[#allocation2 + $0xfa] sm:$0xff]  ;;  %v962_v14 = vld [vmem:[#allocation2 + $0x108] sm:$0xff] }
  0x93   : > { %v1024_v13 = vadd.f32 %v992_v9, %v925_v16  ;;  %v699_v28 = vmul.f32 %v1697_v24, %v2042_v44  ;;  %v406_v22 = vmul.f32 %v1668_v6, %v958_v37  ;;  %v504_v23 = vmul.f32 %v1674_v8, %v1056_v27 }
  0x94   : > { %v828_v5 = vadd.f32 %v796_v25, %v730_v21  ;;  %v633_v20 = vadd.f32 %v601_v62, %v535_v58  ;;  %v1255_v39 = vadd.f32 %v1822_v1, %v1219_v45  ;;  %v993_v26 = vmul.f32 %v1724_v40, %v960_v15 }
  0x95   : > { %v1122_v29 = vadd.f32 %v1090_v17, %v1024_v13  ;;  %v797_v7 = vmul.f32 %v1709_v32, %v1057_v41  ;;  %v536_v19 = vadd.f32 %v504_v23, %v406_v22  ;;  %v602_v56 = vmul.f32 %v1679_v10, %v1154_v43  ;;  %v1060_v17 = vld [vmem:[#allocation2 + $0x109] sm:$0xff] }
  0x96   : > { %v926_v12 = vadd.f32 %v894_v60, %v828_v5  ;;  %v731_v49 = vadd.f32 %v699_v28, %v633_v20  ;;  %1287 = vst.msk [vmem:[%s1878_s21 + $0x70] sm:$0xff] %vm233_vm0, %v1255_v39  ;;  %v1091_v37 = vmul.f32 %v1732_v46, %v1058_v42  ;;  %v1189_v27 = vmul.f32 %v1737_v47, %v1156_v35 }
  0x97   : > { %v1220_v18 = vadd.f32 %v1188_v51, %v1122_v29  ;;  %v895_v34 = vmul.f32 %v1716_v36, %v2050_v48  ;;  %v634_v30 = vadd.f32 %v602_v56, %v536_v19  ;;  %v700_v0 = vmul.f32 %v1697_v24, %v960_v15  ;;  %v2099_v51 = vld [vmem:[#allocation2 + $0x10a] sm:$0xff]  ;;  %v2122_v19 = vld [vmem:[%s2356_s1] ss:$0 sm:$0xff] }
  0x98   : > { %v1025_v38 = vadd.f32 %v993_v26, %v926_v12  ;;  %v829_v33 = vadd.f32 %v797_v7, %v731_v49  ;;  %v994_v2 = vmul.f32 %v1724_v40, %v961_v61  ;;  %v407_v50 = vmul.f32 %v1668_v6, %v2042_v44  ;;  %v1061_v26 = vld [vmem:[#allocation2 + $0x111] sm:$0xff] }
  0x99   : > { %v1256_v43 = vadd.f32 %v1822_v1, %v1220_v18  ;;  %v505_v3 = vmul.f32 %v1674_v8, %v1057_v41  ;;  %v732_v55 = vadd.f32 %v700_v0, %v634_v30  ;;  %v798_v9 = vmul.f32 %v1709_v32, %v1058_v42  ;;  %v2117_v49 = vld [vmem:[#allocation2 + $0x112] sm:$0xff]  ;;  %v2128_v18 = vld [vmem:[%s2356_s1 + $0x1] ss:$0 sm:$0xff] }
  0x9a   : > { %v1123_v53 = vadd.f32 %v1091_v37, %v1025_v38  ;;  %v927_v57 = vadd.f32 %v895_v34, %v829_v33  ;;  %v1092_v11 = vmul.f32 %v1732_v46, %v1059_v59  ;;  %v1190_v31 = vmul.f32 %v1737_v47, %v2082_v52  ;;  %v2136_v0 = vld [vmem:[#allocation2 + $0x120] sm:$0xff] }
  0x9b   : > { %1288 = vst.msk [vmem:[%s1878_s21 + $0x78] sm:$0xff] %vm233_vm0, %v1256_v43  ;;  %v537_v54 = vadd.f32 %v505_v3, %v407_v50  ;;  %v603_v63 = vmul.f32 %v1679_v10, %v2050_v48  ;;  %v830_v41 = vadd.f32 %v798_v9, %v732_v55  ;;  %v896_v16 = vmul.f32 %v1716_v36, %v1156_v35  ;;  %v2141_v43 = vld [vmem:[%s2356_s1 + $0x2] ss:$0 sm:$0xff] }
  0x9c   : > { %v1221_v44 = vadd.f32 %v1189_v27, %v1123_v53  ;;  %v1026_v4 = vadd.f32 %v994_v2, %v927_v57  ;;  %v701_v25 = vmul.f32 %v1697_v24, %v961_v61  ;;  %v408_v58 = vmul.f32 %v1668_v6, %v960_v15  ;;  %v963_v15 = vld [vmem:[#allocation2 + $0x110] sm:$0xff]  ;;  %v1062_v53 = vld [vmem:[#allocation2 + $0x121] sm:$0xff] }
  0x9d   : > { %v635_v21 = vadd.f32 %v603_v63, %v537_v54  ;;  %v506_v62 = vmul.f32 %v1674_v8, %v1058_v42  ;;  %v928_v48 = vadd.f32 %v896_v16, %v830_v41  ;;  %v995_v60 = vmul.f32 %v1724_v40, %v962_v14  ;;  %v2149_v57 = vld [vmem:[#allocation2 + $0x122] sm:$0xff] }
  0x9e   : > { %v1257_v45 = vadd.f32 %v1822_v1, %v1221_v44  ;;  %v1124_v13 = vadd.f32 %v1092_v11, %v1026_v4  ;;  %v799_v5 = vmul.f32 %v1709_v32, %v1059_v59  ;;  %v604_v22 = vmul.f32 %v1679_v10, %v1156_v35  ;;  %v2155_v11 = vld [vmem:[%s2356_s1 + $0x3] ss:$0 sm:$0xff] }
  0x9f   : > { %v733_v28 = vadd.f32 %v701_v25, %v635_v21  ;;  %v538_v20 = vadd.f32 %v506_v62, %v408_v58  ;;  %v1027_v39 = vadd.f32 %v995_v60, %v928_v48  ;;  %v1093_v6 = vmul.f32 %v1732_v46, %v1060_v17  ;;  %v2170_v21 = vld [vmem:[%s2356_s1 + $0x4] ss:$0 sm:$0xff]  ;;  %v1063_v62 = vld [vmem:[#allocation2 + $0x129] sm:$0xff] }
  0xa0   : > { %1289 = vst.msk [vmem:[%s1878_s21 + $0x80] sm:$0xff] %vm233_vm0, %v1257_v45  ;;  %v1222_v23 = vadd.f32 %v1190_v31, %v1124_v13  ;;  %v1191_v8 = vmul.f32 %v1737_v47, %v2099_v51  ;;  %v897_v29 = vmul.f32 %v1716_v36, %v2082_v52  ;;  %v702_v12 = vmul.f32 %v1697_v24, %v962_v14 }
  0xa1   : > { %v831_v42 = vadd.f32 %v799_v5, %v733_v28  ;;  %v636_v7 = vadd.f32 %v604_v22, %v538_v20  ;;  %v1125_v35 = vadd.f32 %v1093_v6, %v1027_v39  ;;  %v409_v56 = vmul.f32 %v2122_v19, %v961_v61  ;;  %v1161_v20 = vld [vmem:[#allocation2 + $0x12a] sm:$0xff]  ;;  %v2190_v39 = vld [vmem:[%s2356_s1 + $0x6] ss:$0 sm:$0xff] }
  0xa2   : > { %v1258_v10 = vadd.f32 %v1822_v1, %v1222_v23  ;;  %v507_v37 = vmul.f32 %v2128_v18, %v1059_v59  ;;  %v996_v27 = vmul.f32 %v1724_v40, %v963_v15  ;;  %v800_v38 = vmul.f32 %v1709_v32, %v1060_v17 }
  0xa3   : > { %v929_v24 = vadd.f32 %v897_v29, %v831_v42  ;;  %v734_v34 = vadd.f32 %v702_v12, %v636_v7  ;;  %v1223_v33 = vadd.f32 %v1191_v8, %v1125_v35  ;;  %v1094_v30 = vmul.f32 %v1732_v46, %v1061_v26  ;;  %v2196_v8 = vld [vmem:[%s2356_s1 + $0x7] ss:$0 sm:$0xff]  ;;  %v966_v7 = vld [vmem:[#allocation2 + $0x138] sm:$0xff] }
  0xa4   : > { %1290 = vst.msk [vmem:[%s1878_s21 + $0x88] sm:$0xff] %vm233_vm0, %v1258_v10  ;;  %v539_v61 = vadd.f32 %v507_v37, %v409_v56  ;;  %v605_v59 = vmul.f32 %v2141_v43, %v2082_v52  ;;  %v1192_v32 = vmul.f32 %v1737_v47, %v2117_v49  ;;  %v898_v3 = vmul.f32 %v1716_v36, %v2099_v51  ;;  %v1064_v12 = vld [vmem:[#allocation2 + $0x139] sm:$0xff]  ;;  %v2207_v37 = vld [vmem:[%s2356_s1 + $0x8] ss:$0 sm:$0xff] }
  0xa5   : > { %v1028_v2 = vadd.f32 %v996_v27, %v929_v24  ;;  %v832_v50 = vadd.f32 %v800_v38, %v734_v34  ;;  %v1259_v55 = vadd.f32 %v1822_v1, %v1223_v33  ;;  %v703_v52 = vmul.f32 %v2155_v11, %v963_v15  ;;  %v1162_v34 = vld [vmem:[#allocation2 + $0x13a] sm:$0xff] }
  0xa6   : > { %v637_v9 = vadd.f32 %v605_v59, %v539_v61  ;;  %v410_v31 = vmul.f32 %v2122_v19, %v962_v14  ;;  %v997_v36 = vmul.f32 %v1724_v40, %v2136_v0  ;;  %v508_v44 = vmul.f32 %v2128_v18, %v1060_v17  ;;  %v965_v40 = vld [vmem:[#allocation2 + $0x128] sm:$0xff] }
  0xa7   : > { %v1126_v54 = vadd.f32 %v1094_v30, %v1028_v2  ;;  %v930_v63 = vadd.f32 %v898_v3, %v832_v50  ;;  %1291 = vst.msk [vmem:[%s1878_s21 + $0x90] sm:$0xff] %vm233_vm0, %v1259_v55  ;;  %v1095_v4 = vmul.f32 %v1732_v46, %v1062_v53  ;;  %v1193_v41 = vmul.f32 %v1737_v47, %v2149_v57  ;;  %v2178_v47 = vld [vmem:[%s2356_s1 + $0x5] ss:$0 sm:$0xff] }
  0xa8   : > { %v735_v16 = vadd.f32 %v703_v52, %v637_v9  ;;  %v801_v14 = vmul.f32 %v2170_v21, %v1061_v26  ;;  %v540_v17 = vadd.f32 %v508_v44, %v410_v31  ;;  %v606_v45 = vmul.f32 %v2141_v43, %v2099_v51  ;;  %v2218_v50 = vld [vmem:[#allocation2 + $0x140] sm:$0xff] }
  0xa9   : > { %v1224_v25 = vadd.f32 %v1192_v32, %v1126_v54  ;;  %v1029_v58 = vadd.f32 %v997_v36, %v930_v63  ;;  %v899_v13 = vmul.f32 %v2178_v47, %v2117_v49  ;;  %v704_v48 = vmul.f32 %v2155_v11, %v2136_v0  ;;  %v1065_v63 = vld [vmem:[#allocation2 + $0x141] sm:$0xff] }
  0xaa   : > { %v833_v46 = vadd.f32 %v801_v14, %v735_v16  ;;  %v411_v60 = vmul.f32 %v2122_v19, %v963_v15  ;;  %v638_v51 = vadd.f32 %v606_v45, %v540_v17  ;;  %v509_v22 = vmul.f32 %v2128_v18, %v1061_v26  ;;  %v2226_v36 = vld [vmem:[#allocation2 + $0x142] sm:$0xff] }
  0xab   : > { %v1260_v28 = vadd.f32 %v1822_v1, %v1224_v25  ;;  %v1127_v5 = vadd.f32 %v1095_v4, %v1029_v58  ;;  %v998_v6 = vmul.f32 %v2190_v39, %v965_v40  ;;  %v1096_v15 = vmul.f32 %v2196_v8, %v1063_v62 }
  0xac   : > { %v931_v23 = vadd.f32 %v899_v13, %v833_v46  ;;  %v802_v42 = vmul.f32 %v2170_v21, %v1062_v53  ;;  %v736_v26 = vadd.f32 %v704_v48, %v638_v51  ;;  %v541_v10 = vadd.f32 %v509_v22, %v411_v60 }
  0xad   : > { %1292 = vst.msk [vmem:[%s1878_s21 + $0x98] sm:$0xff] %vm233_vm0, %v1260_v28  ;;  %v1225_v29 = vadd.f32 %v1193_v41, %v1127_v5  ;;  %v607_v35 = vmul.f32 %v2141_v43, %v2117_v49  ;;  %v1194_v24 = vmul.f32 %v2207_v37, %v1161_v20  ;;  %v900_v27 = vmul.f32 %v2178_v47, %v2149_v57 }
  0xae   : > { %v1030_v56 = vadd.f32 %v998_v6, %v931_v23  ;;  %v705_v38 = vmul.f32 %v2155_v11, %v965_v40  ;;  %v834_v30 = vadd.f32 %v802_v42, %v736_v26  ;;  %v412_v49 = vmul.f32 %v2122_v19, %v2136_v0  ;;  %v1066_v42 = vld [vmem:[#allocation2 + $0x151] sm:$0xff] }
  0xaf   : > { %v1261_v33 = vadd.f32 %v1822_v1, %v1225_v29  ;;  %v639_v61 = vadd.f32 %v607_v35, %v541_v10  ;;  %v999_v2 = vmul.f32 %v2190_v39, %v966_v7  ;;  %v1097_v32 = vmul.f32 %v2196_v8, %v1064_v12  ;;  %v1164_v29 = vld [vmem:[#allocation2 + $0x152] sm:$0xff] }
  0xb0   : > { %v1128_v59 = vadd.f32 %v1096_v15, %v1030_v56  ;;  %v510_v3 = vmul.f32 %v2128_v18, %v1062_v53  ;;  %v932_v55 = vadd.f32 %v900_v27, %v834_v30  ;;  %v1195_v9 = vmul.f32 %v2207_v37, %v1162_v34  ;;  %v969_v30 = vld [vmem:[#allocation2 + $0x158] sm:$0xff] }
  0xb1   : > { %1293 = vst.msk [vmem:[%s1878_s21 + $0xa0] sm:$0xff] %vm233_vm0, %v1261_v33  ;;  %v737_v52 = vadd.f32 %v705_v38, %v639_v61  ;;  %v803_v31 = vmul.f32 %v2170_v21, %v1063_v62  ;;  %v901_v0 = vmul.f32 %v2178_v47, %v1161_v20  ;;  %v608_v4 = vmul.f32 %v2141_v43, %v2149_v57 }
  0xb2   : > { %v1226_v54 = vadd.f32 %v1194_v24, %v1128_v59  ;;  %v542_v44 = vadd.f32 %v510_v3, %v412_v49  ;;  %v1031_v53 = vadd.f32 %v999_v2, %v932_v55  ;;  %v1000_v16 = vmul.f32 %v2190_v39, %v2218_v50  ;;  %v1067_v55 = vld [vmem:[#allocation2 + $0x159] sm:$0xff] }
  0xb3   : > { %v835_v41 = vadd.f32 %v803_v31, %v737_v52  ;;  %v413_v14 = vmul.f32 %v2122_v19, %v965_v40  ;;  %v706_v17 = vmul.f32 %v2155_v11, %v966_v7  ;;  %v511_v45 = vmul.f32 %v2128_v18, %v1063_v62  ;;  %v968_v40 = vld [vmem:[#allocation2 + $0x150] sm:$0xff] }
  0xb4   : > { %v1262_v25 = vadd.f32 %v1822_v1, %v1226_v54  ;;  %v640_v58 = vadd.f32 %v608_v4, %v542_v44  ;;  %v1129_v46 = vadd.f32 %v1097_v32, %v1031_v53  ;;  %v1098_v48 = vmul.f32 %v2196_v8, %v1065_v63 }
  0xb5   : > { %v933_v13 = vadd.f32 %v901_v0, %v835_v41  ;;  %v1196_v57 = vmul.f32 %v2207_v37, %v2226_v36  ;;  %v804_v28 = vmul.f32 %v2170_v21, %v1064_v12  ;;  %v543_v5 = vadd.f32 %v511_v45, %v413_v14 }
  0xb6   : > { %1294 = vst.msk [vmem:[%s1878_s21 + $0xa8] sm:$0xff] %vm233_vm0, %v1262_v25  ;;  %v738_v60 = vadd.f32 %v706_v17, %v640_v58  ;;  %v609_v51 = vmul.f32 %v2141_v43, %v1161_v20  ;;  %v1227_v22 = vadd.f32 %v1195_v9, %v1129_v46  ;;  %v902_v62 = vmul.f32 %v2178_v47, %v1162_v34  ;;  %v1165_v9 = vld [vmem:[#allocation2 + $0x15a] sm:$0xff]  ;;  %v970_v58 = vld [vmem:[#allocation2 + $0x168] sm:$0xff] }
  0xb7   : > { %v1032_v23 = vadd.f32 %v1000_v16, %v933_v13  ;;  %v707_v6 = vmul.f32 %v2155_v11, %v2218_v50  ;;  %v414_v10 = vmul.f32 %v2122_v19, %v966_v7  ;;  %v512_v35 = vmul.f32 %v2128_v18, %v1064_v12  ;;  %v1068_v13 = vld [vmem:[#allocation2 + $0x169] sm:$0xff] }
  0xb8   : > { %v836_v15 = vadd.f32 %v804_v28, %v738_v60  ;;  %v641_v26 = vadd.f32 %v609_v51, %v543_v5  ;;  %v1263_v56 = vadd.f32 %v1822_v1, %v1227_v22  ;;  %v1001_v20 = vmul.f32 %v2190_v39, %v968_v40  ;;  %v2278_v51 = vld [vmem:[%s2357_s2] ss:$0 sm:$0xff] }
  0xb9   : > { %v1130_v24 = vadd.f32 %v1098_v48, %v1032_v23  ;;  %v805_v27 = vmul.f32 %v2170_v21, %v1065_v63  ;;  %v544_v61 = vadd.f32 %v512_v35, %v414_v10  ;;  %v610_v49 = vmul.f32 %v2141_v43, %v1162_v34  ;;  %v1166_v48 = vld [vmem:[#allocation2 + $0x16a] sm:$0xff] }
  0xba   : > { %v934_v38 = vadd.f32 %v902_v62, %v836_v15  ;;  %v739_v33 = vadd.f32 %v707_v6, %v641_v26  ;;  %1295 = vst.msk [vmem:[%s1878_s21 + $0xb0] sm:$0xff] %vm233_vm0, %v1263_v56  ;;  %v1099_v7 = vmul.f32 %v2196_v8, %v1066_v42  ;;  %v1197_v12 = vmul.f32 %v2207_v37, %v1164_v29 }
  0xbb   : > { %v1228_v59 = vadd.f32 %v1196_v57, %v1130_v24  ;;  %v903_v2 = vmul.f32 %v2178_v47, %v2226_v36  ;;  %v642_v52 = vadd.f32 %v610_v49, %v544_v61  ;;  %v708_v31 = vmul.f32 %v2155_v11, %v968_v40  ;;  %v971_v24 = vld [vmem:[#allocation2 + $0x170] sm:$0xff] }
  0xbc   : > { %v1033_v32 = vadd.f32 %v1001_v20, %v934_v38  ;;  %v837_v3 = vadd.f32 %v805_v27, %v739_v33  ;;  %v1002_v54 = vmul.f32 %v2190_v39, %v969_v30  ;;  %v415_v0 = vmul.f32 %v2122_v19, %v2218_v50  ;;  %v1069_v38 = vld [vmem:[#allocation2 + $0x171] sm:$0xff] }
  0xbd   : > { %v1264_v34 = vadd.f32 %v1822_v1, %v1228_v59  ;;  %v513_v44 = vmul.f32 %v2128_v18, %v1065_v63  ;;  %v740_v41 = vadd.f32 %v708_v31, %v642_v52  ;;  %v806_v16 = vmul.f32 %v2170_v21, %v1066_v42  ;;  %v1167_v59 = vld [vmem:[#allocation2 + $0x172] sm:$0xff] }
  0xbe   : > { %v1131_v4 = vadd.f32 %v1099_v7, %v1033_v32  ;;  %v935_v53 = vadd.f32 %v903_v2, %v837_v3  ;;  %v1100_v14 = vmul.f32 %v2196_v8, %v1067_v55  ;;  %v1198_v25 = vmul.f32 %v2207_v37, %v1165_v9 }
  0xbf   : > { %1296 = vst.msk [vmem:[%s1878_s21 + $0xb8] sm:$0xff] %vm233_vm0, %v1264_v34  ;;  %v545_v1 = vadd.f32 %v513_v44, %v415_v0  ;;  %v611_v17 = vmul.f32 %v2141_v43, %v2226_v36  ;;  %v838_v46 = vadd.f32 %v806_v16, %v740_v41  ;;  %v904_v63 = vmul.f32 %v2178_v47, %v1164_v29  ;;  %v1070_v41 = vld [vmem:[#allocation2 + $0x181] sm:$0xff] }
  0xc0   : > { %v1229_v45 = vadd.f32 %v1197_v12, %v1131_v4  ;;  %v1034_v50 = vadd.f32 %v1002_v54, %v935_v53  ;;  %v709_v60 = vmul.f32 %v2155_v11, %v969_v30  ;;  %v416_v28 = vmul.f32 %v2122_v19, %v968_v40  ;;  %v972_v54 = vld [vmem:[#allocation2 + $0x180] sm:$0xff] }
  0xc1   : > { %v643_v57 = vadd.f32 %v611_v17, %v545_v1  ;;  %v514_v5 = vmul.f32 %v2128_v18, %v1066_v42  ;;  %v936_v23 = vadd.f32 %v904_v63, %v838_v46  ;;  %v1003_v62 = vmul.f32 %v2190_v39, %v970_v58  ;;  %v1168_v46 = vld [vmem:[#allocation2 + $0x182] sm:$0xff] }
  0xc2   : > { %v1265_v36 = vadd.f32 %v2278_v51, %v1229_v45  ;;  %v1132_v22 = vadd.f32 %v1100_v14, %v1034_v50  ;;  %v807_v15 = vmul.f32 %v2170_v21, %v1067_v55  ;;  %v612_v10 = vmul.f32 %v2141_v43, %v1164_v29 }
  0xc3   : > { %v741_v6 = vadd.f32 %v709_v60, %v643_v57  ;;  %v546_v26 = vadd.f32 %v514_v5, %v416_v28  ;;  %v1035_v42 = vadd.f32 %v1003_v62, %v936_v23  ;;  %v1101_v35 = vmul.f32 %v2196_v8, %v1068_v13 }
  0xc4   : > { %1297 = vst.msk [vmem:[%s1878_s21 + $0xc0] sm:$0xff] %vm233_vm0, %v1265_v36  ;;  %v1230_v40 = vadd.f32 %v1198_v25, %v1132_v22  ;;  %v1199_v56 = vmul.f32 %v2207_v37, %v1166_v48  ;;  %v905_v27 = vmul.f32 %v2178_v47, %v1165_v9  ;;  %v710_v61 = vmul.f32 %v2155_v11, %v970_v58  ;;  %v973_v22 = vld [vmem:[#allocation2 + $0x188] sm:$0xff] }
  0xc5   : > { %v839_v20 = vadd.f32 %v807_v15, %v741_v6  ;;  %v644_v33 = vadd.f32 %v612_v10, %v546_v26  ;;  %v1133_v29 = vadd.f32 %v1101_v35, %v1035_v42  ;;  %v417_v7 = vmul.f32 %v2122_v19, %v969_v30 }
  0xc6   : > { %v1266_v49 = vadd.f32 %v2278_v51, %v1230_v40  ;;  %v515_v12 = vmul.f32 %v2128_v18, %v1067_v55  ;;  %v1004_v32 = vmul.f32 %v2190_v39, %v971_v24  ;;  %v808_v52 = vmul.f32 %v2170_v21, %v1068_v13  ;;  %v1071_v40 = vld [vmem:[#allocation2 + $0x189] sm:$0xff] }
  0xc7   : > { %v937_v2 = vadd.f32 %v905_v27, %v839_v20  ;;  %v742_v3 = vadd.f32 %v710_v61, %v644_v33  ;;  %v1231_v31 = vadd.f32 %v1199_v56, %v1133_v29  ;;  %v1102_v34 = vmul.f32 %v2196_v8, %v1069_v38  ;;  %v974_v27 = vld [vmem:[#allocation2 + $0x198] sm:$0xff] }
  0xc8   : > { %1298 = vst.msk [vmem:[%s1878_s21 + $0xc8] sm:$0xff] %vm233_vm0, %v1266_v49  ;;  %v547_v0 = vadd.f32 %v515_v12, %v417_v7  ;;  %v613_v44 = vmul.f32 %v2141_v43, %v1165_v9  ;;  %v1200_v30 = vmul.f32 %v2207_v37, %v1167_v59  ;;  %v906_v53 = vmul.f32 %v2178_v47, %v1166_v48 }
  0xc9   : > { %v1036_v4 = vadd.f32 %v1004_v32, %v937_v2  ;;  %v840_v55 = vadd.f32 %v808_v52, %v742_v3  ;;  %v1267_v16 = vadd.f32 %v2278_v51, %v1231_v31  ;;  %v711_v25 = vmul.f32 %v2155_v11, %v971_v24  ;;  %v975_v31 = vld [vmem:[#allocation2 + $0x1a0] sm:$0xff] }
  0xca   : > { %v645_v14 = vadd.f32 %v613_v44, %v547_v0  ;;  %v418_v1 = vmul.f32 %v2122_v19, %v970_v58  ;;  %v1005_v50 = vmul.f32 %v2190_v39, %v972_v54  ;;  %v516_v9 = vmul.f32 %v2128_v18, %v1068_v13 }
  0xcb   : > { %v1134_v17 = vadd.f32 %v1102_v34, %v1036_v4  ;;  %v938_v45 = vadd.f32 %v906_v53, %v840_v55  ;;  %1299 = vst.msk [vmem:[%s1878_s21 + $0xd0] sm:$0xff] %vm233_vm0, %v1267_v16  ;;  %v1103_v63 = vmul.f32 %v2196_v8, %v1070_v41  ;;  %v809_v60 = vmul.f32 %v2170_v21, %v1069_v38  ;;  %v1170_v4 = vld [vmem:[#allocation2 + $0x19a] sm:$0xff] }
  0xcc   : > { %v743_v57 = vadd.f32 %v711_v25, %v645_v14  ;;  %v614_v28 = vmul.f32 %v2141_v43, %v1166_v48  ;;  %v548_v58 = vadd.f32 %v516_v9, %v418_v1  ;;  %v712_v23 = vmul.f32 %v2155_v11, %v972_v54  ;;  %v1073_v14 = vld [vmem:[#allocation2 + $0x1a1] sm:$0xff] }
  0xcd   : > { %v1232_v5 = vadd.f32 %v1200_v30, %v1134_v17  ;;  %v1037_v36 = vadd.f32 %v1005_v50, %v938_v45  ;;  %v1201_v62 = vmul.f32 %v2207_v37, %v1168_v46  ;;  %v907_v13 = vmul.f32 %v2178_v47, %v1167_v59 }
  0xce   : > { %v841_v6 = vadd.f32 %v809_v60, %v743_v57  ;;  %v419_v15 = vmul.f32 %v2122_v19, %v971_v24  ;;  %v646_v42 = vadd.f32 %v614_v28, %v548_v58  ;;  %v517_v48 = vmul.f32 %v2128_v18, %v1069_v38  ;;  %v1169_v19 = vld [vmem:[#allocation2 + $0x18a] sm:$0xff] }
  0xcf   : > { %v1268_v26 = vadd.f32 %v2278_v51, %v1232_v5  ;;  %v1135_v10 = vadd.f32 %v1103_v63, %v1037_v36  ;;  %v1006_v56 = vmul.f32 %v2190_v39, %v973_v22  ;;  %v810_v20 = vmul.f32 %v2170_v21, %v1070_v41 }
  0xd0   : > { %v939_v35 = vadd.f32 %v907_v13, %v841_v6  ;;  %v615_v33 = vmul.f32 %v2141_v43, %v1167_v59  ;;  %v744_v24 = vadd.f32 %v712_v23, %v646_v42  ;;  %v549_v49 = vadd.f32 %v517_v48, %v419_v15  ;;  %v1072_v43 = vld [vmem:[#allocation2 + $0x199] sm:$0xff] }
  0xd1   : > { %1300 = vst.msk [vmem:[%s1878_s21 + $0xd8] sm:$0xff] %vm233_vm0, %v1268_v26  ;;  %v1233_v61 = vadd.f32 %v1201_v62, %v1135_v10  ;;  %v713_v29 = vmul.f32 %v2155_v11, %v973_v22  ;;  %v1104_v18 = vmul.f32 %v2196_v8, %v1071_v40  ;;  %v908_v38 = vmul.f32 %v2178_v47, %v1168_v46 }
  0xd2   : > { %v1038_v7 = vadd.f32 %v1006_v56, %v939_v35  ;;  %v842_v2 = vadd.f32 %v810_v20, %v744_v24  ;;  %v1007_v32 = vmul.f32 %v2190_v39, %v974_v27  ;;  %v647_v59 = vadd.f32 %v615_v33, %v549_v49 }
  0xd3   : > { %v1269_v12 = vadd.f32 %v2278_v51, %v1233_v61  ;;  %v1202_v52 = vmul.f32 %v2207_v37, %v1169_v19  ;;  %v811_v54 = vmul.f32 %v2170_v21, %v1071_v40  ;;  %v1105_v44 = vmul.f32 %v2196_v8, %v1072_v43  ;;  %v1171_v21 = vld [vmem:[#allocation2 + $0x1a2] sm:$0xff] }
  0xd4   : > { %v1136_v3 = vadd.f32 %v1104_v18, %v1038_v7  ;;  %v940_v11 = vadd.f32 %v908_v38, %v842_v2  ;;  %v745_v34 = vadd.f32 %v713_v29, %v647_v59  ;;  %v909_v53 = vmul.f32 %v2178_v47, %v1169_v19 }
  0xd5   : > { %1301 = vst.msk [vmem:[%s1878_s21 + $0xe0] sm:$0xff] %vm233_vm0, %v1269_v12  ;;  %v1008_v41 = vmul.f32 %v2190_v39, %v975_v31  ;;  %v1203_v1 = vmul.f32 %v2207_v37, %v1170_v4  ;;  %v1106_v46 = vmul.f32 %v2196_v8, %v1073_v14  ;;  %v1204_v39 = vmul.f32 %v2207_v37, %v1171_v21 }
  0xd6   : > { %v1234_v0 = vadd.f32 %v1202_v52, %v1136_v3  ;;  %v1039_v30 = vadd.f32 %v1007_v32, %v940_v11  ;;  %v843_v55 = vadd.f32 %v811_v54, %v745_v34 }
  0xd8   : > { %v1270_v16 = vadd.f32 %v2278_v51, %v1234_v0  ;;  %v1137_v25 = vadd.f32 %v1105_v44, %v1039_v30  ;;  %v941_v17 = vadd.f32 %v909_v53, %v843_v55 }
  0xda   : > { %1302 = vst.msk [vmem:[%s1878_s21 + $0xe8] sm:$0xff] %vm233_vm0, %v1270_v16  ;;  %v1235_v45 = vadd.f32 %v1203_v1, %v1137_v25  ;;  %v1040_v50 = vadd.f32 %v1008_v41, %v941_v17 }
  0xdc   : > { %v1271_v9 = vadd.f32 %v2278_v51, %v1235_v45  ;;  %v1138_v47 = vadd.f32 %v1106_v46, %v1040_v50 }
  0xde   : > { %1303 = vst.msk [vmem:[%s1878_s21 + $0xf0] sm:$0xff] %vm233_vm0, %v1271_v9  ;;  %v1236_v63 = vadd.f32 %v1204_v39, %v1138_v47 }
  0xe0   : > { %v1272_v57 = vadd.f32 %v2278_v51, %v1236_v63 }
  0xe2   : > { %1304 = vst.msk [vmem:[%s1878_s21 + $0xf8] sm:$0xff] %vm233_vm0, %v1272_v57 }
  0xe3 PF: > { %s13_s14 = sadd.s32 1, %s1498_s14   ;;  %s2359_s12 = smov %s1494_s13 }
  0xe4   : > { %p10_p5 = scmp.ge.s32.totalorder %s13_s14, 4   ;;  %s2360_s13 = smov %s2362_s15 }
  0xe6   :  { %12 = sbr.rel (!%p10_p5) target bundleno = 2 (0x2), region = 70 }

</bundles_post_ra>
